<compile_context>
chip_gen: v6e
topology: v6e:2x2x1
jax: 0.10.0
libtpu: 0.0.40
codegen_flags: <defaults>
</compile_context>

<pallas_src>
import functools
from collections import namedtuple

import jax
import jax.numpy as jnp
from jax.experimental import pallas as pl
from jax.experimental.pallas import tpu as pltpu

LossTuple = namedtuple(
    "LossTuple",
    ["rpn_loc_loss", "rpn_cls_loss", "roi_loc_loss", "roi_cls_loss", "total_loss"],
)


def _round_up(x, mult):
    return ((x + mult - 1) // mult) * mult


def _round_up_128(x):
    return _round_up(x, 128)


# ----------------------------------------------------------------------------
# Pallas kernels
# ----------------------------------------------------------------------------
def _rpn_fused_kernel(x_ref, w_ext_ref, b_ext_ref, w_rpn_ref, b_rpn_ref,
                      w_heads_ref, b_heads_ref, side_gt_ref, side_w_ref,
                      feat_ref, o_ref, *, n_anchor, sigma):
    """Fused extractor + RPN + losses for one row tile.

    feat  = relu(x @ W_ext + b)              (also written out for ROI pool)
    hid   = relu(feat @ W_rpn + b)
    heads = hid @ [W_loc | W_score(c0) | W_score(c1) | 0-pad] + b   (128 lanes)
    -> smooth-L1 + 2-class CE partial sums in one lane-dense (1,8,128) block.

    Side-band layout (both (tm,128) f32):
      side_gt : lanes [0:4A) = gt_loc, lanes [4A:4A+A) = label (-1/0/1), rest 0
      side_w  : lanes [0:4A) = in_weight (label>0 repeated x4), rest 0
    """
    feat = jnp.dot(x_ref[...], w_ext_ref[...],
                   preferred_element_type=jnp.float32) + b_ext_ref[...]
    feat = jnp.maximum(feat, 0.0).astype(jnp.bfloat16)
    feat_ref[...] = feat                                   # second output (ROI pool)

    hid = jnp.dot(feat, w_rpn_ref[...],
                  preferred_element_type=jnp.float32) + b_rpn_ref[...]
    hid = jnp.maximum(hid, 0.0).astype(jnp.bfloat16)       # stays in VMEM
    heads = jnp.dot(hid, w_heads_ref[...],
                    preferred_element_type=jnp.float32) + b_heads_ref[...]

    a4 = n_anchor * 4
    hp = heads.shape[-1]
    side_gt = side_gt_ref[...]
    side_w = side_w_ref[...]

    # smooth-L1 over all 128 lanes (lanes >= 4A contribute 0 because side_w==0)
    sigma2 = sigma * sigma
    diff = side_w * (heads - side_gt)
    abs_diff = jnp.abs(diff)
    flag = (abs_diff < (1.0 / sigma2)).astype(jnp.float32)
    y = flag * (0.5 * sigma2) * diff * diff + (1.0 - flag) * (abs_diff - 0.5 / sigma2)
    loc_sum = jnp.sum(y)

    # 2-class CE: class-1 logit lanes rolled onto the class-0 lanes (XLU),
    # full-lane math masked by `valid` (only the A class-0 lanes, label >= 0).
    l0 = heads
    l1 = pltpu.roll(heads, shift=hp - n_anchor, axis=1)    # lane i <- lane i+A
    lane = jax.lax.broadcasted_iota(jnp.int32, heads.shape, 1)
    cls_lane = jnp.logical_and(lane >= a4, lane < a4 + n_anchor)
    label_f = side_gt                                      # only class lanes matter
    valid = jnp.where(cls_lane, (label_f >= 0.0).astype(jnp.float32), 0.0)
    is1 = (label_f == 1.0).astype(jnp.float32)

    mx = jnp.maximum(l0, l1)
    lse = mx + jnp.log(jnp.exp(l0 - mx) + jnp.exp(l1 - mx))
    picked = l0 + is1 * (l1 - l0)
    cls_sum = jnp.sum((lse - picked) * valid)
    val_sum = jnp.sum(valid)

    lane_o = jax.lax.broadcasted_iota(jnp.int32, (1, 8, 128), 2)
    o_ref[...] = (jnp.where(lane_o == 0, loc_sum, 0.0)
                  + jnp.where(lane_o == 1, cls_sum, 0.0)
                  + jnp.where(lane_o == 2, val_sum, 0.0))


def _roi_fused_kernel(pool_ref, w_top_ref, b_top_ref, w_heads_ref, b_heads_ref,
                      side_gt_ref, side_w_ref, o_ref, acc_ref, *, n_class, sigma):
    """Fused ROI head, K-tiled over pool_feat with a VMEM f32 accumulator.

    Side-band layout (both (S_pad,128) f32):
      side_gt : lanes [0:4C) = gt_loc tiled per class, lanes [4C:5C) = one-hot
      side_w  : lanes [0:4C) = one-hot(x4) * (label>0), rest 0
    """
    k = pl.program_id(0)

    @pl.when(k == 0)
    def _():
        acc_ref[...] = jnp.zeros_like(acc_ref)

    acc_ref[...] += jnp.dot(pool_ref[...], w_top_ref[...],
                            preferred_element_type=jnp.float32)

    @pl.when(k == pl.num_programs(0) - 1)
    def _():
        top = jnp.maximum(acc_ref[...] + b_top_ref[...], 0.0).astype(jnp.bfloat16)
        heads = jnp.dot(top, w_heads_ref[...],
                        preferred_element_type=jnp.float32) + b_heads_ref[...]

        side_gt = side_gt_ref[...]
        side_w = side_w_ref[...]
        sigma2 = sigma * sigma
        diff = side_w * (heads - side_gt)
        abs_diff = jnp.abs(diff)
        flag = (abs_diff < (1.0 / sigma2)).astype(jnp.float32)
        y = flag * (0.5 * sigma2) * diff * diff + (1.0 - flag) * (abs_diff - 0.5 / sigma2)
        loc_sum = jnp.sum(y)

        c4 = n_class * 4
        lane = jax.lax.broadcasted_iota(jnp.int32, heads.shape, 1)
        cls_lane = jnp.logical_and(lane >= c4, lane < c4 + n_class)
        neg = jnp.float32(-1e30)
        m_row = jnp.max(jnp.where(cls_lane, heads, neg), axis=-1, keepdims=True)
        e = jnp.exp(jnp.where(cls_lane, heads - m_row, neg))
        lse = m_row + jnp.log(jnp.sum(e, axis=-1, keepdims=True))
        onehot = jnp.where(cls_lane, side_gt, 0.0)
        picked = jnp.sum(onehot * heads, axis=-1, keepdims=True)
        row_valid = jnp.sum(onehot, axis=-1, keepdims=True)   # 1 real row, 0 pad row
        cls_sum = jnp.sum((lse - picked) * row_valid)

        lane_o = jax.lax.broadcasted_iota(jnp.int32, (1, 8, 128), 2)
        o_ref[...] = (jnp.where(lane_o == 0, loc_sum, 0.0)
                      + jnp.where(lane_o == 1, cls_sum, 0.0))


# ----------------------------------------------------------------------------
# Pallas wrappers
# ----------------------------------------------------------------------------
def pallas_rpn_fused(x_flat, w_ext, b_ext, w_rpn, b_rpn, w_heads, b_heads,
                     side_gt, side_w, *, n_anchor, sigma, tm):
    m_pad, c_in = x_flat.shape
    c_feat = w_ext.shape[1]
    hp = w_heads.shape[1]
    nt = m_pad // tm
    kernel = functools.partial(_rpn_fused_kernel, n_anchor=n_anchor, sigma=float(sigma))
    cost = pl.CostEstimate(
        flops=int(2 * m_pad * (c_in * c_feat + c_feat * c_feat + c_feat * hp)),
        transcendentals=int(3 * m_pad * hp),
        bytes_accessed=int(m_pad * c_in * 2 + 2 * m_pad * hp * 4 + m_pad * c_feat * 2
                           + (c_in * c_feat + c_feat * c_feat + c_feat * hp) * 2
                           + nt * 8 * 128 * 4),
    )
    feat, partials = pl.pallas_call(
        kernel,
        out_shape=(jax.ShapeDtypeStruct((m_pad, c_feat), jnp.bfloat16),
                   jax.ShapeDtypeStruct((nt, 8, 128), jnp.float32)),
        grid=(nt,),
        in_specs=[
            pl.BlockSpec((tm, c_in), lambda i: (i, 0)),        # input rows
            pl.BlockSpec((c_in, c_feat), lambda i: (0, 0)),    # W_ext
            pl.BlockSpec((1, c_feat), lambda i: (0, 0)),       # b_ext
            pl.BlockSpec((c_feat, c_feat), lambda i: (0, 0)),  # W_rpn
            pl.BlockSpec((1, c_feat), lambda i: (0, 0)),       # b_rpn
            pl.BlockSpec((c_feat, hp), lambda i: (0, 0)),      # fused/padded head W
            pl.BlockSpec((1, hp), lambda i: (0, 0)),           # fused head bias
            pl.BlockSpec((tm, hp), lambda i: (i, 0)),          # side_gt (lane dense)
            pl.BlockSpec((tm, hp), lambda i: (i, 0)),          # side_w  (lane dense)
        ],
        out_specs=(pl.BlockSpec((tm, c_feat), lambda i: (i, 0)),
                   pl.BlockSpec((1, 8, 128), lambda i: (i, 0, 0))),
        compiler_params=pltpu.CompilerParams(
            dimension_semantics=("parallel",),
            vmem_limit_bytes=32 * 1024 * 1024),
        cost_estimate=cost,
    )(x_flat, w_ext, b_ext, w_rpn, b_rpn, w_heads, b_heads, side_gt, side_w)
    return feat, partials


def pallas_roi_fused(pool_feat, w_top, b_top, w_heads, b_heads, side_gt, side_w,
                     *, n_class, sigma, tk):
    s_pad, kdim = pool_feat.shape
    hidden = w_top.shape[1]
    hp = w_heads.shape[1]
    kt = kdim // tk
    kernel = functools.partial(_roi_fused_kernel, n_class=n_class, sigma=float(sigma))
    cost = pl.CostEstimate(
        flops=int(2 * s_pad * (kdim * hidden + hidden * hp)),
        transcendentals=int(2 * s_pad * hp),
        bytes_accessed=int(s_pad * kdim * 2 + kdim * hidden * 2 + hidden * hp * 2
                           + 2 * s_pad * hp * 4 + 8 * 128 * 4),
    )
    return pl.pallas_call(
        kernel,
        out_shape=jax.ShapeDtypeStruct((1, 8, 128), jnp.float32),
        grid=(kt,),
        in_specs=[
            pl.BlockSpec((s_pad, tk), lambda k: (0, k)),       # pooled rows (K tile)
            pl.BlockSpec((tk, hidden), lambda k: (k, 0)),      # W_top (K tile)
            pl.BlockSpec((1, hidden), lambda k: (0, 0)),       # b_top
            pl.BlockSpec((hidden, hp), lambda k: (0, 0)),      # fused/padded ROI head W
            pl.BlockSpec((1, hp), lambda k: (0, 0)),           # fused head bias
            pl.BlockSpec((s_pad, hp), lambda k: (0, 0)),       # side_gt
            pl.BlockSpec((s_pad, hp), lambda k: (0, 0)),       # side_w
        ],
        out_specs=pl.BlockSpec((1, 8, 128), lambda k: (0, 0, 0)),
        scratch_shapes=[pltpu.VMEM((s_pad, hidden), jnp.float32)],
        compiler_params=pltpu.CompilerParams(
            dimension_semantics=("arbitrary",),
            vmem_limit_bytes=32 * 1024 * 1024),
        cost_estimate=cost,
    )(pool_feat, w_top, b_top, w_heads, b_heads, side_gt, side_w)


# ----------------------------------------------------------------------------
# FasterRCNNBase (training path) with synthetic sub-modules
# ----------------------------------------------------------------------------
class FasterRCNNBasePallas:
    def __init__(self, n_class, c_in, c_feat, hidden, spatial_scale, pooling_size,
                 roi_sigma, rpn_sigma=3.0, n_anchor=3, n_sample=64, m_tile=512, key=None):
        self.n_class = n_class
        self.c_in = c_in
        self.c_feat = c_feat
        self.hidden = hidden
        self.spatial_scale = spatial_scale
        self.pooling_size = pooling_size
        self.roi_sigma = roi_sigma
        self.rpn_sigma = rpn_sigma
        self.n_anchor = n_anchor
        self.n_sample = n_sample
        self.m_tile = m_tile
        self.loc_normalize_mean = (0.0, 0.0, 0.0, 0.0)
        self.loc_normalize_std = (0.1, 0.1, 0.2, 0.2)
        self.nms_thresh = 0.3
        self.score_thresh = 0.05

        if key is None:
            key = jax.random.PRNGKey(42)
        ks = jax.random.split(key, 8)
        s = 0.02
        pool_feat = pooling_size * pooling_size * c_feat
        a4 = n_anchor * 4
        self.hp_rpn = _round_up_128(n_anchor * 6)
        self.hp_roi = _round_up_128(n_class * 5)

        # extractor (1x1 conv) -- weights cast to bf16 ONCE here
        self.W_ext = (s * jax.random.normal(ks[0], (c_in, c_feat), jnp.float32)).astype(jnp.bfloat16)
        self.b_ext = jnp.zeros((1, c_feat), jnp.float32)

        # rpn conv
        self.W_rpn = (s * jax.random.normal(ks[1], (c_feat, c_feat), jnp.float32)).astype(jnp.bfloat16)
        self.b_rpn = jnp.zeros((1, c_feat), jnp.float32)

        # rpn loc + score heads, fused into one lane-dense (c_feat, 128) matrix.
        # Layout: [0:4A) loc (anchor-major), [4A:5A) class-0 logits, [5A:6A) class-1.
        W_rpn_loc = s * jax.random.normal(ks[2], (c_feat, a4), jnp.float32)
        W_rpn_score = s * jax.random.normal(ks[3], (c_feat, n_anchor * 2), jnp.float32)
        w_h = jnp.zeros((c_feat, self.hp_rpn), jnp.float32)
        w_h = w_h.at[:, :a4].set(W_rpn_loc)
        w_h = w_h.at[:, a4:a4 + n_anchor].set(W_rpn_score[:, 0::2])
        w_h = w_h.at[:, a4 + n_anchor:a4 + 2 * n_anchor].set(W_rpn_score[:, 1::2])
        self.W_rpn_heads = w_h.astype(jnp.bfloat16)
        self.b_rpn_heads = jnp.zeros((1, self.hp_rpn), jnp.float32)

        # top layer + fused ROI loc/score heads (padded to 128 lanes)
        self.W_top = (s * jax.random.normal(ks[4], (pool_feat, hidden), jnp.float32)).astype(jnp.bfloat16)
        self.b_top = jnp.zeros((1, hidden), jnp.float32)
        W_loc = s * jax.random.normal(ks[5], (hidden, n_class * 4), jnp.float32)
        W_score = s * jax.random.normal(ks[6], (hidden, n_class), jnp.float32)
        w_h2 = jnp.zeros((hidden, self.hp_roi), jnp.float32)
        w_h2 = w_h2.at[:, :n_class * 4].set(W_loc)
        w_h2 = w_h2.at[:, n_class * 4:n_class * 5].set(W_score)
        self.W_roi_heads = w_h2.astype(jnp.bfloat16)
        self.b_roi_heads = jnp.zeros((1, self.hp_roi), jnp.float32)

        # K tile for the ROI top-layer matmul
        for cand in (512, 256, 128):
            if pool_feat % cand == 0:
                self.roi_tk = cand
                break
        else:
            self.roi_tk = pool_feat

    # ---- ROI pooling (XLA gather glue) -----------------------------------------
    def _roi_pool(self, feature, roi):
        # TODO(synk): true ROIAlign needs data-dependent bilinear gathers; kept as
        # nearest-neighbor XLA gather glue rather than a Pallas prefetch-gather kernel.
        p = self.pooling_size
        f = feature[0]
        roi_f = roi * self.spatial_scale
        y1, x1, y2, x2 = roi_f[:, 0], roi_f[:, 1], roi_f[:, 2], roi_f[:, 3]
        bins = (jnp.arange(p, dtype=jnp.float32) + 0.5) / p
        ys = y1[:, None] + bins[None, :] * (y2 - y1)[:, None]
        xs = x1[:, None] + bins[None, :] * (x2 - x1)[:, None]
        yi = jnp.clip(jnp.floor(ys).astype(jnp.int32), 0, f.shape[0] - 1)
        xi = jnp.clip(jnp.floor(xs).astype(jnp.int32), 0, f.shape[1] - 1)
        pooled = f[yi[:, :, None], xi[:, None, :], :]          # (S, P, P, C) bf16
        return pooled.reshape(roi.shape[0], -1)

    # ---- training forward pass (matches FasterRCNNBase.forward, training=True) --
    def __call__(self, x, scale, gt_bboxes, gt_labels):
        n, c_in, h, w = x.shape                 # PyTorch-style NCHW input
        del scale, gt_bboxes, gt_labels         # consumed only by the real RPN target code
        m = n * h * w
        A = self.n_anchor
        a4 = A * 4
        hp = self.hp_rpn

        # Row tile & M padding: grid always even and >= 2 (v7x 2-TC friendly).
        if m >= 2 * self.m_tile:
            tm = self.m_tile
        else:
            tm = max(8, _round_up(-(-m // 2), 8))
        m_pad = _round_up(m, 2 * tm)

        # NCHW -> NHWC once, in bf16 (halves the transpose traffic); pad rows.
        x_flat = jnp.transpose(x.astype(jnp.bfloat16), (0, 2, 3, 1)).reshape(m, c_in)
        x_flat = jnp.pad(x_flat, ((0, m_pad - m), (0, 0)))

        # TODO(synk): real RPN anchor-target assignment / proposal NMS has no clean
        # Pallas equivalent; deterministic synthetic targets are used instead.
        aidx = jnp.arange(m * A)
        gt_rpn_label = jnp.where(aidx % 7 == 0, 1.0,
                                 jnp.where(aidx % 3 == 0, 0.0, -1.0)
                                 ).astype(jnp.float32).reshape(m, A)
        gt_rpn_loc = (0.05 * jnp.stack(
            [jnp.sin(aidx * 0.1), jnp.cos(aidx * 0.1),
             jnp.sin(aidx * 0.2), jnp.cos(aidx * 0.2)], axis=1)
        ).astype(jnp.float32).reshape(m, a4)
        rpn_in_w = jnp.repeat((gt_rpn_label > 0).astype(jnp.float32), 4, axis=1)

        # Lane-dense side-band: gt_loc + label in one stream, in_weight in another.
        side_gt = jnp.zeros((m_pad, hp), jnp.float32)
        side_gt = side_gt.at[:m, :a4].set(gt_rpn_loc)
        side_gt = side_gt.at[:m, a4:a4 + A].set(gt_rpn_label)
        side_gt = side_gt.at[m:, a4:a4 + A].set(-1.0)          # pad rows -> ignore
        side_w = jnp.zeros((m_pad, hp), jnp.float32)
        side_w = side_w.at[:m, :a4].set(rpn_in_w)

        # --- fused extractor + RPN chain + losses (single kernel) ---
        feat_flat, partials = pallas_rpn_fused(
            x_flat, self.W_ext, self.b_ext, self.W_rpn, self.b_rpn,
            self.W_rpn_heads, self.b_rpn_heads, side_gt, side_w,
            n_anchor=A, sigma=self.rpn_sigma, tm=tm)

        sums = jnp.sum(partials[:, 0, :], axis=0)              # tiny XLA reduce
        denom = jnp.maximum(sums[2], 1.0)
        rpn_loc_loss = sums[0] / denom
        rpn_cls_loss = sums[1] / denom

        feature = feat_flat[:m].reshape(n, h, w, self.c_feat)

        # --- sampled ROIs + ROI targets (deterministic synthetic) ---
        S = self.n_sample
        ridx = jnp.arange(S)
        cy = (ridx % h).astype(jnp.float32)
        cx = ((ridx * 5) % w).astype(jnp.float32)
        roi = jnp.stack([jnp.clip(cy - 3.0, 0.0, h - 1.0),
                         jnp.clip(cx - 3.0, 0.0, w - 1.0),
                         jnp.clip(cy + 3.0, 1.0, float(h)),
                         jnp.clip(cx + 3.0, 1.0, float(w))], axis=1)
        gt_roi_label = (ridx % self.n_class).astype(jnp.int32)
        gt_roi_loc = 0.1 * jnp.stack(
            [jnp.cos(ridx * 0.3), jnp.sin(ridx * 0.3),
             jnp.cos(ridx * 0.7), jnp.sin(ridx * 0.7)], axis=1).astype(jnp.float32)

        roi_pool_feat = self._roi_pool(feature, roi)           # (S, P*P*C) bf16
        s_pad = _round_up(max(S, 128), 128)                    # MXU row fill
        roi_pool_feat = jnp.pad(roi_pool_feat, ((0, s_pad - S), (0, 0)))

        # Lane-dense ROI side-band (class gather fused as one-hot masks).
        c4 = self.n_class * 4
        onehot = (jnp.arange(self.n_class)[None, :] == gt_roi_label[:, None]).astype(jnp.float32)
        sel_w = jnp.repeat(onehot, 4, axis=1) * (gt_roi_label > 0).astype(jnp.float32)[:, None]
        gt_exp = jnp.tile(gt_roi_loc, (1, self.n_class))
        roi_side_gt = jnp.zeros((s_pad, self.hp_roi), jnp.float32)
        roi_side_gt = roi_side_gt.at[:S, :c4].set(gt_exp)
        roi_side_gt = roi_side_gt.at[:S, c4:c4 + self.n_class].set(onehot)
        roi_side_w = jnp.zeros((s_pad, self.hp_roi), jnp.float32)
        roi_side_w = roi_side_w.at[:S, :c4].set(sel_w)

        roi_out = pallas_roi_fused(
            roi_pool_feat, self.W_top, self.b_top, self.W_roi_heads, self.b_roi_heads,
            roi_side_gt, roi_side_w,
            n_class=self.n_class, sigma=self.roi_sigma, tk=self.roi_tk)

        roi_valid = jnp.maximum(jnp.sum((gt_roi_label >= 0).astype(jnp.float32)), 1.0)
        roi_loc_loss = roi_out[0, 0, 0] / roi_valid
        roi_cls_loss = roi_out[0, 0, 1] / float(S)

        total = rpn_loc_loss + rpn_cls_loss + roi_loc_loss + roi_cls_loss
        return LossTuple(rpn_loc_loss, rpn_cls_loss, roi_loc_loss, roi_cls_loss, total)


if __name__ == "__main__":
    key = jax.random.PRNGKey(0)
    kx, kb, kl = jax.random.split(key, 3)
    N, C_IN, H, W = 1, 8, 16, 16
    x = jax.random.normal(kx, (N, C_IN, H, W), dtype=jnp.float32)
    gt_bboxes = jax.random.uniform(kb, (1, 5, 4), minval=0.0, maxval=float(H))
    gt_labels = jax.random.randint(kl, (1, 5), 0, 7)

    model = FasterRCNNBasePallas(
        n_class=8, c_in=C_IN, c_feat=128, hidden=128,
        spatial_scale=1.0, pooling_size=4, roi_sigma=1.0,
        key=jax.random.PRNGKey(42))

    losses = model(x, scale=1.0, gt_bboxes=gt_bboxes, gt_labels=gt_labels)
    jax.block_until_ready(losses.total_loss)
    print("KERNEL_OK")
</pallas_src>

<mosaic_0001>
module attributes {stable_mosaic.version = 11 : i64} {
  func.func @_rpn_fused_kernel(%arg0: i32, %arg1: memref<128x8xbf16, #tpu.memory_space<vmem>>, %arg2: memref<8x128xbf16, #tpu.memory_space<vmem>>, %arg3: memref<1x128xf32, #tpu.memory_space<vmem>>, %arg4: memref<128x128xbf16, #tpu.memory_space<vmem>>, %arg5: memref<1x128xf32, #tpu.memory_space<vmem>>, %arg6: memref<128x128xbf16, #tpu.memory_space<vmem>>, %arg7: memref<1x128xf32, #tpu.memory_space<vmem>>, %arg8: memref<128x128xf32, #tpu.memory_space<vmem>>, %arg9: memref<128x128xf32, #tpu.memory_space<vmem>>, %arg10: memref<128x128xbf16, #tpu.memory_space<vmem>>, %arg11: memref<1x8x128xf32, #tpu.memory_space<vmem>>) attributes {dimension_semantics = [#tpu.dimension_semantics<parallel>], iteration_bounds = array<i64: 2>, scalar_prefetch = 0 : i64, scratch_operands = 0 : i64, tpu.core_type = #tpu.core_type<tc>, window_params = [{transform_indices = @transform_0, window_bounds = array<i64: 128, 8>}, {pipeline_mode = #tpu.pipeline_mode<synchronous>, transform_indices = @transform_1, window_bounds = array<i64: 8, 128>}, {pipeline_mode = #tpu.pipeline_mode<synchronous>, transform_indices = @transform_2, window_bounds = array<i64: 1, 128>}, {pipeline_mode = #tpu.pipeline_mode<synchronous>, transform_indices = @transform_3, window_bounds = array<i64: 128, 128>}, {pipeline_mode = #tpu.pipeline_mode<synchronous>, transform_indices = @transform_4, window_bounds = array<i64: 1, 128>}, {pipeline_mode = #tpu.pipeline_mode<synchronous>, transform_indices = @transform_5, window_bounds = array<i64: 128, 128>}, {pipeline_mode = #tpu.pipeline_mode<synchronous>, transform_indices = @transform_6, window_bounds = array<i64: 1, 128>}, {transform_indices = @transform_7, window_bounds = array<i64: 128, 128>}, {transform_indices = @transform_8, window_bounds = array<i64: 128, 128>}, {transform_indices = @transform_9, window_bounds = array<i64: 128, 128>}, {transform_indices = @transform_10, window_bounds = array<i64: 1, 8, 128>}]} {
    %c0 = arith.constant 0 : index
    %c0_0 = arith.constant 0 : index
    %0 = vector.load %arg1[%c0, %c0_0] : memref<128x8xbf16, #tpu.memory_space<vmem>>, vector<128x8xbf16>
    %c0_1 = arith.constant 0 : index
    %c0_2 = arith.constant 0 : index
    %1 = vector.load %arg2[%c0_1, %c0_2] : memref<8x128xbf16, #tpu.memory_space<vmem>>, vector<8x128xbf16>
    %cst = arith.constant dense<0.000000e+00> : vector<128x128xf32>
    %2 = tpu.matmul %0, %1, %cst {dimension_numbers = #tpu.dot_dimension_numbers<[1], [0], [0], [1], [0, 0, 1, 1], [], []>} : vector<128x8xbf16>, vector<8x128xbf16>, vector<128x128xf32> -> vector<128x128xf32>
    %c0_3 = arith.constant 0 : index
    %c0_4 = arith.constant 0 : index
    %3 = vector.load %arg3[%c0_3, %c0_4] : memref<1x128xf32, #tpu.memory_space<vmem>>, vector<1x128xf32>
    %4 = vector.broadcast %3 : vector<1x128xf32> to vector<128x128xf32>
    %5 = arith.addf %2, %4 : vector<128x128xf32>
    %cst_5 = arith.constant 0.000000e+00 : f32
    %6 = vector.broadcast %cst_5 : f32 to vector<128x128xf32>
    %7 = arith.maximumf %5, %6 : vector<128x128xf32>
    %8 = arith.truncf %7 : vector<128x128xf32> to vector<128x128xbf16>
    %c0_6 = arith.constant 0 : index
    %c0_7 = arith.constant 0 : index
    %9 = vector.load %arg10[%c0_6, %c0_7] : memref<128x128xbf16, #tpu.memory_space<vmem>>, vector<128x128xbf16>
    tpu.vector_store %arg10[%c0_6, %c0_7], %8 {strides = array<i32>} : memref<128x128xbf16, #tpu.memory_space<vmem>>, vector<128x128xbf16>,
    %c0_8 = arith.constant 0 : index
    %c0_9 = arith.constant 0 : index
    %10 = vector.load %arg4[%c0_8, %c0_9] : memref<128x128xbf16, #tpu.memory_space<vmem>>, vector<128x128xbf16>
    %cst_10 = arith.constant dense<0.000000e+00> : vector<128x128xf32>
    %11 = tpu.matmul %8, %10, %cst_10 {dimension_numbers = #tpu.dot_dimension_numbers<[1], [0], [0], [1], [0, 0, 1, 1], [], []>} : vector<128x128xbf16>, vector<128x128xbf16>, vector<128x128xf32> -> vector<128x128xf32>
    %c0_11 = arith.constant 0 : index
    %c0_12 = arith.constant 0 : index
    %12 = vector.load %arg5[%c0_11, %c0_12] : memref<1x128xf32, #tpu.memory_space<vmem>>, vector<1x128xf32>
    %13 = vector.broadcast %12 : vector<1x128xf32> to vector<128x128xf32>
    %14 = arith.addf %11, %13 : vector<128x128xf32>
    %cst_13 = arith.constant 0.000000e+00 : f32
    %15 = vector.broadcast %cst_13 : f32 to vector<128x128xf32>
    %16 = arith.maximumf %14, %15 : vector<128x128xf32>
    %17 = arith.truncf %16 : vector<128x128xf32> to vector<128x128xbf16>
    %c0_14 = arith.constant 0 : index
    %c0_15 = arith.constant 0 : index
    %18 = vector.load %arg6[%c0_14, %c0_15] : memref<128x128xbf16, #tpu.memory_space<vmem>>, vector<128x128xbf16>
    %cst_16 = arith.constant dense<0.000000e+00> : vector<128x128xf32>
    %19 = tpu.matmul %17, %18, %cst_16 {dimension_numbers = #tpu.dot_dimension_numbers<[1], [0], [0], [1], [0, 0, 1, 1], [], []>} : vector<128x128xbf16>, vector<128x128xbf16>, vector<128x128xf32> -> vector<128x128xf32>
    %c0_17 = arith.constant 0 : index
    %c0_18 = arith.constant 0 : index
    %20 = vector.load %arg7[%c0_17, %c0_18] : memref<1x128xf32, #tpu.memory_space<vmem>>, vector<1x128xf32>
    %21 = vector.broadcast %20 : vector<1x128xf32> to vector<128x128xf32>
    %22 = arith.addf %19, %21 : vector<128x128xf32>
    %c0_19 = arith.constant 0 : index
    %c0_20 = arith.constant 0 : index
    %23 = vector.load %arg8[%c0_19, %c0_20] : memref<128x128xf32, #tpu.memory_space<vmem>>, vector<128x128xf32>
    %c0_21 = arith.constant 0 : index
    %c0_22 = arith.constant 0 : index
    %24 = vector.load %arg9[%c0_21, %c0_22] : memref<128x128xf32, #tpu.memory_space<vmem>>, vector<128x128xf32>
    %25 = arith.subf %22, %23 : vector<128x128xf32>
    %26 = arith.mulf %24, %25 : vector<128x128xf32>
    %27 = math.absf %26 : vector<128x128xf32>
    %cst_23 = arith.constant 0.111111112 : f32
    %28 = vector.broadcast %cst_23 : f32 to vector<128x128xf32>
    %29 = arith.cmpf olt, %27, %28 : vector<128x128xf32>
    %30 = arith.extui %29 : vector<128x128xi1> to vector<128x128xi32>
    %31 = arith.sitofp %30 : vector<128x128xi32> to vector<128x128xf32>
    %cst_24 = arith.constant 4.500000e+00 : f32
    %32 = vector.broadcast %cst_24 : f32 to vector<128x128xf32>
    %33 = arith.mulf %31, %32 : vector<128x128xf32>
    %34 = arith.mulf %33, %26 : vector<128x128xf32>
    %35 = arith.mulf %34, %26 : vector<128x128xf32>
    %cst_25 = arith.constant 1.000000e+00 : f32
    %36 = vector.broadcast %cst_25 : f32 to vector<128x128xf32>
    %37 = arith.subf %36, %31 : vector<128x128xf32>
    %cst_26 = arith.constant 0.055555556 : f32
    %38 = vector.broadcast %cst_26 : f32 to vector<128x128xf32>
    %39 = arith.subf %27, %38 : vector<128x128xf32>
    %40 = arith.mulf %37, %39 : vector<128x128xf32>
    %41 = arith.addf %35, %40 : vector<128x128xf32>
    %42 = vector.shape_cast %41 : vector<128x128xf32> to vector<1x128x128xf32>
    %cst_27 = arith.constant dense<0.000000e+00> : vector<1xf32>
    %43 = vector.multi_reduction <add>, %42, %cst_27 [1, 2] : vector<1x128x128xf32> to vector<1xf32>
    %44 = vector.shape_cast %43 : vector<1xf32> to vector<1x1x1xf32>
    %45 = vector.extract %44[0, 0, 0] : f32 from vector<1x1x1xf32>
    %c125_i32 = arith.constant 125 : i32
    %46 = tpu.dynamic_rotate %22 by %c125_i32 dim 1 : vector<128x128xf32>, i32 -> vector<128x128xf32>
    %47 = tpu.iota {dimensions = array<i32: 1>} : vector<128x128xi32>
    %c12_i32 = arith.constant 12 : i32
    %48 = vector.broadcast %c12_i32 : i32 to vector<128x128xi32>
    %49 = arith.cmpi sge, %47, %48 : vector<128x128xi32>
    %c15_i32 = arith.constant 15 : i32
    %50 = vector.broadcast %c15_i32 : i32 to vector<128x128xi32>
    %51 = arith.cmpi slt, %47, %50 : vector<128x128xi32>
    %52 = arith.andi %49, %51 : vector<128x128xi1>
    %cst_28 = arith.constant 0.000000e+00 : f32
    %53 = vector.broadcast %cst_28 : f32 to vector<128x128xf32>
    %54 = arith.cmpf oge, %23, %53 : vector<128x128xf32>
    %55 = arith.extui %54 : vector<128x128xi1> to vector<128x128xi32>
    %56 = arith.sitofp %55 : vector<128x128xi32> to vector<128x128xf32>
    %cst_29 = arith.constant 0.000000e+00 : f32
    %57 = vector.broadcast %cst_29 : f32 to vector<128x128xf32>
    %58 = arith.select %52, %56, %57 : vector<128x128xi1>, vector<128x128xf32>
    %cst_30 = arith.constant 1.000000e+00 : f32
    %59 = vector.broadcast %cst_30 : f32 to vector<128x128xf32>
    %60 = arith.cmpf oeq, %23, %59 : vector<128x128xf32>
    %61 = arith.extui %60 : vector<128x128xi1> to vector<128x128xi32>
    %62 = arith.sitofp %61 : vector<128x128xi32> to vector<128x128xf32>
    %63 = arith.maximumf %22, %46 : vector<128x128xf32>
    %64 = arith.subf %22, %63 : vector<128x128xf32>
    %65 = math.exp %64 : vector<128x128xf32>
    %66 = arith.subf %46, %63 : vector<128x128xf32>
    %67 = math.exp %66 : vector<128x128xf32>
    %68 = arith.addf %65, %67 : vector<128x128xf32>
    %69 = math.log %68 : vector<128x128xf32>
    %70 = arith.addf %63, %69 : vector<128x128xf32>
    %71 = arith.subf %46, %22 : vector<128x128xf32>
    %72 = arith.mulf %62, %71 : vector<128x128xf32>
    %73 = arith.addf %22, %72 : vector<128x128xf32>
    %74 = arith.subf %70, %73 : vector<128x128xf32>
    %75 = arith.mulf %74, %58 : vector<128x128xf32>
    %76 = vector.shape_cast %75 : vector<128x128xf32> to vector<1x128x128xf32>
    %cst_31 = arith.constant dense<0.000000e+00> : vector<1xf32>
    %77 = vector.multi_reduction <add>, %76, %cst_31 [1, 2] : vector<1x128x128xf32> to vector<1xf32>
    %78 = vector.shape_cast %77 : vector<1xf32> to vector<1x1x1xf32>
    %79 = vector.extract %78[0, 0, 0] : f32 from vector<1x1x1xf32>
    %80 = vector.shape_cast %58 : vector<128x128xf32> to vector<1x128x128xf32>
    %cst_32 = arith.constant dense<0.000000e+00> : vector<1xf32>
    %81 = vector.multi_reduction <add>, %80, %cst_32 [1, 2] : vector<1x128x128xf32> to vector<1xf32>
    %82 = vector.shape_cast %81 : vector<1xf32> to vector<1x1x1xf32>
    %83 = vector.extract %82[0, 0, 0] : f32 from vector<1x1x1xf32>
    %84 = tpu.iota {dimensions = array<i32: 2>} : vector<1x8x128xi32>
    %c0_i32 = arith.constant 0 : i32
    %85 = vector.broadcast %c0_i32 : i32 to vector<1x8x128xi32>
    %86 = arith.cmpi eq, %84, %85 : vector<1x8x128xi32>
    %cst_33 = arith.constant 0.000000e+00 : f32
    %87 = vector.broadcast %45 : f32 to vector<1x8x128xf32>
    %88 = vector.broadcast %cst_33 : f32 to vector<1x8x128xf32>
    %89 = arith.select %86, %87, %88 : vector<1x8x128xi1>, vector<1x8x128xf32>
    %c1_i32 = arith.constant 1 : i32
    %90 = vector.broadcast %c1_i32 : i32 to vector<1x8x128xi32>
    %91 = arith.cmpi eq, %84, %90 : vector<1x8x128xi32>
    %cst_34 = arith.constant 0.000000e+00 : f32
    %92 = vector.broadcast %79 : f32 to vector<1x8x128xf32>
    %93 = vector.broadcast %cst_34 : f32 to vector<1x8x128xf32>
    %94 = arith.select %91, %92, %93 : vector<1x8x128xi1>, vector<1x8x128xf32>
    %95 = arith.addf %89, %94 : vector<1x8x128xf32>
    %c2_i32 = arith.constant 2 : i32
    %96 = vector.broadcast %c2_i32 : i32 to vector<1x8x128xi32>
    %97 = arith.cmpi eq, %84, %96 : vector<1x8x128xi32>
    %cst_35 = arith.constant 0.000000e+00 : f32
    %98 = vector.broadcast %83 : f32 to vector<1x8x128xf32>
    %99 = vector.broadcast %cst_35 : f32 to vector<1x8x128xf32>
    %100 = arith.select %97, %98, %99 : vector<1x8x128xi1>, vector<1x8x128xf32>
    %101 = arith.addf %95, %100 : vector<1x8x128xf32>
    %c0_36 = arith.constant 0 : index
    %c0_37 = arith.constant 0 : index
    %c0_38 = arith.constant 0 : index
    %102 = vector.load %arg11[%c0_36, %c0_37, %c0_38] : memref<1x8x128xf32, #tpu.memory_space<vmem>>, vector<1x8x128xf32>
    tpu.vector_store %arg11[%c0_36, %c0_37, %c0_38], %101 {strides = array<i32>} : memref<1x8x128xf32, #tpu.memory_space<vmem>>, vector<1x8x128xf32>,
    return
  }
  func.func @transform_0(%arg0: i32) -> (i32, i32) {
    %c0_i32 = arith.constant 0 : i32
    %c0_i32_0 = arith.constant 0 : i32
    return %arg0, %c0_i32 : i32, i32
  }
  func.func @transform_1(%arg0: i32) -> (i32, i32) {
    %c0_i32 = arith.constant 0 : i32
    %c0_i32_0 = arith.constant 0 : i32
    %c0_i32_1 = arith.constant 0 : i32
    return %c0_i32, %c0_i32_0 : i32, i32
  }
  func.func @transform_2(%arg0: i32) -> (i32, i32) {
    %c0_i32 = arith.constant 0 : i32
    %c0_i32_0 = arith.constant 0 : i32
    %c0_i32_1 = arith.constant 0 : i32
    return %c0_i32, %c0_i32_0 : i32, i32
  }
  func.func @transform_3(%arg0: i32) -> (i32, i32) {
    %c0_i32 = arith.constant 0 : i32
    %c0_i32_0 = arith.constant 0 : i32
    %c0_i32_1 = arith.constant 0 : i32
    return %c0_i32, %c0_i32_0 : i32, i32
  }
  func.func @transform_4(%arg0: i32) -> (i32, i32) {
    %c0_i32 = arith.constant 0 : i32
    %c0_i32_0 = arith.constant 0 : i32
    %c0_i32_1 = arith.constant 0 : i32
    return %c0_i32, %c0_i32_0 : i32, i32
  }
  func.func @transform_5(%arg0: i32) -> (i32, i32) {
    %c0_i32 = arith.constant 0 : i32
    %c0_i32_0 = arith.constant 0 : i32
    %c0_i32_1 = arith.constant 0 : i32
    return %c0_i32, %c0_i32_0 : i32, i32
  }
  func.func @transform_6(%arg0: i32) -> (i32, i32) {
    %c0_i32 = arith.constant 0 : i32
    %c0_i32_0 = arith.constant 0 : i32
    %c0_i32_1 = arith.constant 0 : i32
    return %c0_i32, %c0_i32_0 : i32, i32
  }
  func.func @transform_7(%arg0: i32) -> (i32, i32) {
    %c0_i32 = arith.constant 0 : i32
    %c0_i32_0 = arith.constant 0 : i32
    return %arg0, %c0_i32 : i32, i32
  }
  func.func @transform_8(%arg0: i32) -> (i32, i32) {
    %c0_i32 = arith.constant 0 : i32
    %c0_i32_0 = arith.constant 0 : i32
    return %arg0, %c0_i32 : i32, i32
  }
  func.func @transform_9(%arg0: i32) -> (i32, i32) {
    %c0_i32 = arith.constant 0 : i32
    %c0_i32_0 = arith.constant 0 : i32
    return %arg0, %c0_i32 : i32, i32
  }
  func.func @transform_10(%arg0: i32) -> (i32, i32, i32) {
    %c0_i32 = arith.constant 0 : i32
    %c0_i32_0 = arith.constant 0 : i32
    %c0_i32_1 = arith.constant 0 : i32
    return %arg0, %c0_i32, %c0_i32_0 : i32, i32, i32
  }
}

</mosaic_0001>

<bundles_post_ra>
// kernel: tpu_custom_call.1
= control target key start
LH: loop header
LB: loop body
LE: loop exit
PB: predicated region body
PF: predicated region fallthrough
CT: control target
= control target key end

     0   :  { %s3990_s0 = inlined_call_operand.vmem [shape: bf16[256,8], index: 0, kind: input, shape index: {}]   ;;  %s3991_s1 = inlined_call_operand.vmem [shape: bf16[8,128], index: 1, kind: input, shape index: {}]   ;;  %s3992_s2 = inlined_call_operand.vmem [shape: f32[1,128], index: 2, kind: input, shape index: {}]   ;;  %s3993_s3 = inlined_call_operand.vmem [shape: bf16[128,128], index: 3, kind: input, shape index: {}]   ;;  %s3994_s4 = inlined_call_operand.vmem [shape: f32[1,128], index: 4, kind: input, shape index: {}]   ;;  %s3995_s5 = inlined_call_operand.vmem [shape: bf16[128,128], index: 5, kind: input, shape index: {}]   ;;  %s3996_s6 = inlined_call_operand.vmem [shape: f32[1,128], index: 6, kind: input, shape index: {}]   ;;  %s3997_s7 = inlined_call_operand.hbm [shape: f32[256,128], index: 7, kind: input, shape index: {}]   ;;  %s3998_s8 = inlined_call_operand.hbm [shape: f32[256,128], index: 8, kind: input, shape index: {}]   ;;  %s3999_s9 = inlined_call_operand.hbm [shape: bf16[256,128], index: 9, kind: output, shape index: {0}]   ;;  %s4000_s10 = inlined_call_operand.hbm [shape: f32[2,8,128], index: 10, kind: output, shape index: {1}]  }
   0x1   :  { %4077 = sst [smem:[#allocation47_spill]] %s3997_s7 }
   0x2   :  { %16 = vsyncpa [#allocation3], 0 }
   0x3   :  { %18 = vsyncpa [#allocation3 + $0x1], 0 }
   0x4   :  { %19 = vsyncpa [#allocation6], 0 }
   0x5   :  { %21 = vsyncpa [#allocation6 + $0x1], 0 }
   0x6   :  { %22 = vsyncpa [#allocation4], 0 }
   0x7   :  { %24 = vsyncpa [#allocation4 + $0x1], 0 }
   0x8   :  { %25 = vsyncpa [#allocation9], 0 }
   0x9   :  { %27 = vsyncpa [#allocation9 + $0x1], 0  ;;  %s2744_s13 = smov 0   ;;  %s2746_s14 = smov 0  }
   0xa   :  { %s2748_s15 = smov 0   ;;  %s2750_s16 = smov 0  }
   0xb LB: > { %4078 = sst [smem:[#allocation14_spill]] %s2673_s15  ;;  %s2765_s17 = sadd.s32 4294967295, %s2677_s16   ;;  %s2677_s16 = sphi %s2750_s16, %s4215_s16   ;;  %s2673_s15 = sphi %s2748_s15, %s4217_s15   ;;  %s2669_s14 = sphi %s2746_s14, %s4219_s14   ;;  %s2665_s13 = sphi %s2744_s13, %s4218_s13  }
   0xc   : > { %s2002_s18 = sadd.s32 4294967294, %s2677_s16   ;;  %s2769_s19 = sadd.s32 1, %s2677_s16  }
   0xd   : > { %4079 = sst [smem:[#allocation15_spill]] %s2769_s19  ;;  %s192_s20 = sadd.s32 1, %s2673_s15 }
   0xe   : > { %s189_s21 = ssub.s32 %s2677_s16, %s2769_s19  ;;  %p199_p0 = scmp.ne.s32.totalorder %s2673_s15, %s2669_s14 }
   0xf   : > { %p190_p1 = scmp.eq.s32.totalorder %s189_s21, 0  ;;  %p200_p2 = scmp.eq.s32.totalorder %s2677_s16, 0 }
  0x10   : > { %p205_p3 = scmp.ne.s32.totalorder %s2669_s14, %s2665_s13  ;;  %p206_p4 = scmp.eq.s32.totalorder %s2765_s17, 0 }
  0x11   : > { %s2781_s22 = scalar_select %p190_p1, %s2673_s15, %s192_s20  }
  0x12   : > { %p2783_p5 = por %p200_p2, %p199_p0  ;;  %p2787_p6 = por %p206_p4, %p205_p3 }
  0x13   : > { %4080 = sst [smem:[#allocation16_spill]] %s2781_s22  ;;  %p255_p7 = scmp.eq.s32.totalorder %s2765_s17, 1 }
  0x14   : > { %s4082_s24 = scalar_select %p2787_p6, 1, 0 }
  0x15   : > { %p261_p8 = scmp.eq.s32.totalorder %s2002_s18, 1  ;;  %p2358_p10 = scmp.lt.s32.totalorder %s2677_s16, 2 }
  0x16   : > { %p2794_p11 = por %p255_p7, %p199_p0  ;;  %s2803_s27 = sand.u32 1, %s2673_s15  }
  0x17   : > { %p2798_p12 = por %p261_p8, %p205_p3  ;;  %s4003_s28 = sshll.u32 %s2677_s16, 11 }
  0x18   : > { %s4083_s25 = scalar_select %p2794_p11, 1, 0 }
  0x19   : > { %s4084_s26 = scalar_select %p2798_p12, 1, 0 }
  0x1a   : > { %s4002_s29 = sshll.u32 %s2803_s27, 7  ;;  %s4086_s7 = sld [smem:[#allocation47_spill]] }
  0x1b   : > { %4085 = sst [smem:[#allocation17_spill]] %s4084_s26  ;;  %s338_s18 = scalar_lea.vmem [#allocation2], %s4002_s29 }
  0x1c   : > { %s345_s20 = sshll.u32 %s338_s18, 4  ;;  %p2818_p13 = pnand %p2358_p10, %p2783_p5  ;;  %s2822_s20 = int_to_ptr.vmem [resolvable:$true] %s345_s20 }
  0x1e   : > { %p2525_p1 = pneg %p2818_p13 }
  0x20   : > { %s2812_s12 = scalar_lea.hbm %s4086_s7, %s4003_s28  ;;  %s2528_s23 = scalar_lea.hbm %s4086_s7, 4096 }
  0x21   : > { %s2523_s15 = scalar_lea.hbm %s2812_s12, 2048  ;;  %p2529_p4 = scmp.lt.s32.totalorder %s2812_s12, %s4086_s7 }
  0x22   : > { %p2524_p0 = scmp.ne.s32.totalorder %s2812_s12, %s2523_s15  ;;  %p2530_p5 = scmp.lt.s32.totalorder %s2528_s23, %s2523_s15 }
  0x24   : > { %p2526_p2 = pnand %p2525_p1, %p2524_p0  ;;  %p2531_p7 = por %p2530_p5, %p2529_p4 }
  0x26   : > { %p2527_p3 = pneg %p2526_p2 }
  0x28   : > { %p2532_p8 = pnand %p2531_p7, %p2527_p3 }
  0x2a   : > { %2535 = shalt.err (!%p2532_p8)
}
  0x2b   : > { %s2536_s28 = scalar_lea.vmem %s2822_s20, 2048  ;;  %s2679_s30 = smov [#allocation2]  }
  0x2c   : > { %p2537_p10 = scmp.ne.s32.totalorder %s2822_s20, %s2536_s28  ;;  %s2541_s11 = sshll.u32 %s2679_s30, 4  ;;  %s2542_s11 = int_to_ptr.vmem [resolvable:$false] %s2541_s11 }
  0x2d   : > { %s2543_s22 = scalar_lea.vmem %s2542_s11, 4096  ;;  %p2544_p9 = scmp.lt.s32.totalorder %s2822_s20, %s2542_s11 }
  0x2e   : > { %p2539_p0 = pnand %p2537_p10, %p2525_p1  ;;  %p2545_p12 = scmp.lt.s32.totalorder %s2543_s22, %s2536_s28 }
  0x30   : > { %p2540_p2 = pneg %p2539_p0  ;;  %p2546_p11 = por %p2545_p12, %p2544_p9 }
  0x32   : > { %p2547_p4 = pnand %p2546_p11, %p2540_p2 }
  0x34   : > { %2550 = shalt.err (!%p2547_p4)
}
  0x35   : > { %s4008_s15 = smov 128   ;;  %s2681_s29 = smov 8  }
  0x36   : > { %s4088_s22 = scalar_lea.sflag [#allocation3], %s2803_s27  ;;  %p2011_p9 = scmp.ge.s32.totalorder %s2677_s16, 1 }
  0x37   : > { %2347 = dma.hbm_to_vmem [thread:$0]  (!%p2818_p13), %s2812_s12, 2048, %s2822_s20, %s4088_s22, %s4008_s15, %s4008_s15, %s2681_s29  }
  0x38   : > { %p374_p11 = scmp.lt.s32.totalorder %s2677_s16, 3  ;;  %s4090_s23 = sshll.u32 %s2677_s16, 11 }
  0x39   : > { %s2865_s11 = scalar_lea.hbm %s3998_s8, %s4090_s23  ;;  %s4091_s7 = sshll.u32 %s2803_s27, 7 }
  0x3a   : > { %p2856_p12 = pnand %p2011_p9, %p374_p11  ;;  %s359_s19 = scalar_lea.vmem [#allocation5], %s4091_s7 }
  0x3b   : > { %s366_s26 = sshll.u32 %s359_s19, 4  ;;  %s356_s12 = scalar_lea.sflag [#allocation6], %s2803_s27  ;;  %s2869_s26 = int_to_ptr.vmem [resolvable:$true] %s366_s26 }
  0x3c   : > { %s2551_s20 = scalar_lea.hbm %s2865_s11, 2048  ;;  %s2556_s23 = scalar_lea.hbm %s3998_s8, 4096 }
  0x3d   : > { %p2552_p3 = scmp.ne.s32.totalorder %s2865_s11, %s2551_s20  ;;  %p2557_p8 = scmp.lt.s32.totalorder %s2865_s11, %s3998_s8 }
  0x3e   : > { %p2558_p10 = scmp.lt.s32.totalorder %s2556_s23, %s2551_s20 }
  0x3f   : > { %p2554_p5 = pnand %p2552_p3, %p2525_p1 }
  0x40   : > { %p2559_p0 = por %p2558_p10, %p2557_p8 }
  0x41   : > { %p2555_p7 = pneg %p2554_p5 }
  0x43   : > { %p2560_p2 = pnand %p2559_p0, %p2555_p7 }
  0x45   : > { %2563 = shalt.err (!%p2560_p2)
}
  0x46   : > { %s2564_s7 = scalar_lea.vmem %s2869_s26, 2048  ;;  %s2682_s19 = smov [#allocation5]  }
  0x47   : > { %p2565_p4 = scmp.ne.s32.totalorder %s2869_s26, %s2564_s7  ;;  %s2569_s27 = sshll.u32 %s2682_s19, 4  ;;  %s2570_s27 = int_to_ptr.vmem [resolvable:$false] %s2569_s27 }
  0x48   : > { %s2571_s15 = scalar_lea.vmem %s2570_s27, 4096  ;;  %p2572_p3 = scmp.lt.s32.totalorder %s2869_s26, %s2570_s27 }
  0x49   : > { %p2567_p9 = pnand %p2565_p4, %p2525_p1  ;;  %p2573_p5 = scmp.lt.s32.totalorder %s2571_s15, %s2564_s7 }
  0x4b   : > { %p2568_p11 = pneg %p2567_p9  ;;  %p2574_p6 = por %p2573_p5, %p2572_p3 }
  0x4d   : > { %p2575_p8 = pnand %p2574_p6, %p2568_p11 }
  0x4f   : > { %2578 = shalt.err (!%p2575_p8)
}
  0x50   : > { %s4092_s20 = smov 128   ;;  %378 = sbr.rel (%p2856_p12) target bundleno = 1142 (0x476), region = 56 }
  0x51   : > { %2350 = dma.hbm_to_vmem [thread:$0]  (!%p2818_p13), %s2865_s11, 2048, %s2869_s26, %s356_s12, %s4092_s20, %s4092_s20, %s2681_s29  }
  0x55   : > { %s2900_s22 = sand.u32 1, %s2669_s14   ;;  %p4093_p6 = scmp.ne.s32.totalorder %s4082_s24, 0 }
  0x56   : > { %s2012_s23 = sshll.u32 %s2900_s22, 7  ;;  %s381_s18 = scalar_lea.sflag [#allocation3], %s2900_s22 }
  0x57   : > { %s2904_s30 = scalar_lea.vmem [#allocation2], %s2012_s23 }
  0x58   : > { %2648 = dma.done.wait (%p4093_p6), %s381_s18, 2048  }
  0x59   : > { %2650 = vsyncadd (%p4093_p6), %s381_s18, 4294965248  ;;  %s390_s26 = scalar_lea.sflag [#allocation6], %s2900_s22  ;;  %s2911_s21 = scalar_lea.vmem [#allocation5], %s2012_s23 }
  0x5a   : > { %2652 = dma.done.wait (%p4093_p6), %s390_s26, 2048  }
  0x5b   : > { %2654 = vsyncadd (%p4093_p6), %s390_s26, 4294965248  ;;  %s2016_s29 = sshll.u32 %s2765_s17, 4  ;;  %vm544_vm0 = vcmask 1043456   ;;  %vm519_vm1 = vcmask 64512   ;;  %v471_v0 = vld [vmem:[%s3991_s1] sm:$0xf] }
  0x5c   : > { %p446_p13 = scmp.lt.s32.totalorder %s2016_s29, 31  ;;  %2329 = vmatprep.subr.msk.bf16.mxu0 %vm544_vm0, %v471_v0  ;;  %v546_v1 = vsel %vm544_vm0, %v471_v0, 0  ;;  %v2406_v7 = vld [vmem:[%s3993_s3 + $0x38] sm:$0xff]   ;;  %v2407_v8 = vld [vmem:[%s3993_s3 + $0x30] sm:$0xff]   ;;  %v2408_v9 = vld [vmem:[%s3993_s3 + $0x28] sm:$0xff]   ;;  %s2014_s23 = sshll.u32 %s2900_s22, 6 }
  0x5d   : > { %2248 = vmatpush3.bf16.msra.mxu0 %v546_v1  ;;  %2265 = vmatprep.subr.bf16.mxu1 %v2406_v7  ;;  %v2409_v11 = vld [vmem:[%s3993_s3 + $0x20] sm:$0xff]   ;;  %v2410_v13 = vld [vmem:[%s3993_s3 + $0x18] sm:$0xff]   ;;  %v2411_v15 = vld [vmem:[%s3993_s3 + $0x10] sm:$0xff]   ;;  %s2683_s20 = smov 125   ;;  %p4210_p12 = scmp.ne.s32.totalorder %s4083_s25, 0 }
  0x5e   : > { %s4221_s29 = smov (!%p446_p13, %s2016_s29), 31  ;;  %2266 = vmatpush3.bf16.msra.mxu1 %v2406_v7  ;;  %v2412_v16 = vld [vmem:[%s3993_s3 + $0x8] sm:$0xff]   ;;  %v2413_v17 = vld [vmem:[%s3993_s3] sm:$0xff]   ;;  %v2414_v18 = vld [vmem:[%s3995_s5 + $0x38] sm:$0xff]   ;;  %s2685_s11 = smov [#allocation7]  }
  0x5f   : > { %s2017_s28 = sshll.u32 %s4221_s29, 2  ;;  %2267 = vmatprep.subr.bf16.mxu1 %v2407_v8  ;;  %v2415_v19 = vld [vmem:[%s3995_s5 + $0x30] sm:$0xff]   ;;  %2297 = vmatprep.subr.bf16.mxu0 %v2414_v18  ;;  %v2416_v20 = vld [vmem:[%s3995_s5 + $0x28] sm:$0xff]   ;;  %v2417_v21 = vld [vmem:[%s3995_s5 + $0x20] sm:$0xff]   ;;  %s1831_s29 = scalar_lea.sflag [#allocation4], %s2900_s22 }
  0x60   : > { %s2921_s7 = scalar_lea.vmem %s3990_s0, %s2017_s28  ;;  %v2418_v22 = vld [vmem:[%s3995_s5 + $0x18] sm:$0xff]   ;;  %v2984_v24 = vld [vmem:[%s3992_s2] ss:$0 sm:$0xff]  ;;  %s2583_s12 = sshll.u32 %s2685_s11, 4  ;;  %s2584_s12 = int_to_ptr.vmem [resolvable:$false] %s2583_s12 }
  0x61   : > { %v2398_v2 = vld [vmem:[%s2921_s7] sm:$0xff]   ;;  %v2399_v3 = vld [vmem:[%s2921_s7 + $0x8] sm:$0xff]   ;;  %v2400_v4 = vld [vmem:[%s2921_s7 + $0x10] sm:$0xff]  }
  0x62   : > { %2249 = vmatprep.mubr.msk.bf16.mxu0 %vm519_vm1, %v2398_v2  ;;  %v2401_v5 = vld [vmem:[%s2921_s7 + $0x18] sm:$0xff]   ;;  %v2402_v6 = vld [vmem:[%s2921_s7 + $0x20] sm:$0xff]   ;;  %v2403_v10 = vld [vmem:[%s2921_s7 + $0x28] sm:$0xff]   ;;  %2268 = vmatpush3.bf16.msra.mxu1 %v2407_v8 }
  0x63   : > { %2250 = vmatmul.mubr.msk.bf16.vlgmr.msra.gmra.mxu0 %vm519_vm1, %v2399_v3  ;;  %v2404_v12 = vld [vmem:[%s2921_s7 + $0x30] sm:$0xff]   ;;  %2269 = vmatprep.subr.bf16.mxu1 %v2408_v9  ;;  %v2405_v14 = vld [vmem:[%s2921_s7 + $0x38] sm:$0xff]   ;;  %s2991_s7 = scalar_lea.vmem [#allocation7], %s2014_s23 }
  0x64   : > { %2253 = vmatprep.mubr.msk.bf16.mxu0 %vm519_vm1, %v2400_v4  ;;  %2298 = vmatpush3.bf16.msra.mxu0 %v2414_v18  ;;  %v2421_v18 = vld [vmem:[%s3995_s5] sm:$0xff]  }
  0x65   : > { %2299 = vmatprep.subr.bf16.mxu0 %v2415_v19 }
  0x66   : > { %2270 = vmatpush3.bf16.msra.mxu1 %v2408_v9 }
  0x67   : > { %2271 = vmatprep.subr.bf16.mxu1 %v2409_v11 }
  0x68   : > { %2300 = vmatpush3.bf16.msra.mxu0 %v2415_v19 }
  0x69   : > { %2301 = vmatprep.subr.bf16.mxu0 %v2416_v20 }
  0x6a   : > { %2272 = vmatpush3.bf16.msra.mxu1 %v2409_v11 }
  0x6b   : > { %2254 = vmatmul.mubr.msk.bf16.gmra.mxu0 %vm519_vm1, %v2401_v5  ;;  %2273 = vmatprep.subr.bf16.mxu1 %v2410_v13 }
  0x6c   : > { %2257 = vmatprep.mubr.msk.bf16.mxu0 %vm519_vm1, %v2402_v6  ;;  %2302 = vmatpush3.bf16.msra.mxu0 %v2416_v20 }
  0x6d   : > { %2303 = vmatprep.subr.bf16.mxu0 %v2417_v21 }
  0x6e   : > { %2274 = vmatpush3.bf16.msra.mxu1 %v2410_v13 }
  0x6f   : > { %2275 = vmatprep.subr.bf16.mxu1 %v2411_v15 }
  0x70   : > { %2304 = vmatpush3.bf16.msra.mxu0 %v2417_v21  ;;  %v2051_v21 = vld [vmem:[%s3994_s4] ss:$0 sm:$0xff] }
  0x71   : > { %2305 = vmatprep.subr.bf16.mxu0 %v2418_v22 }
  0x72   : > { %2276 = vmatpush3.bf16.msra.mxu1 %v2411_v15 }
  0x73   : > { %2258 = vmatmul.mubr.msk.bf16.gmra.mxu0 %vm519_vm1, %v2403_v10  ;;  %2277 = vmatprep.subr.bf16.mxu1 %v2412_v16 }
  0x74   : > { %2261 = vmatprep.mubr.msk.bf16.mxu0 %vm519_vm1, %v2404_v12  ;;  %2306 = vmatpush3.bf16.msra.mxu0 %v2418_v22 }
  0x76   : > { %2278 = vmatpush3.bf16.msra.mxu1 %v2412_v16  ;;  %v2419_v16 = vld [vmem:[%s3995_s5 + $0x10] sm:$0xff]  }
  0x77   : > { %2279 = vmatprep.subr.bf16.mxu1 %v2413_v17  ;;  %2307 = vmatprep.subr.bf16.mxu0 %v2419_v16 }
  0x78   : > { %2308 = vmatpush3.bf16.msra.mxu0 %v2419_v16  ;;  %v1119_v16 = vld [vmem:[%s2911_s21 + $0x10] sm:$0xff] }
  0x7a   : > { %2280 = vmatpush3.bf16.msra.mxu1 %v2413_v17  ;;  %v2420_v17 = vld [vmem:[%s3995_s5 + $0x8] sm:$0xff]  }
  0x7b   : > { %2262 = vmatmul.mubr.msk.bf16.gmra.mxu0 %vm519_vm1, %v2405_v14  ;;  %2309 = vmatprep.subr.bf16.mxu0 %v2420_v17 }
  0x7c   : > { %2310 = vmatpush3.bf16.msra.mxu0 %v2420_v17 }
  0x7d   : > { %2311 = vmatprep.subr.bf16.mxu0 %v2421_v18 }
  0x80   : > { %2312 = vmatpush3.bf16.msra.mxu0 %v2421_v18  ;;  %v3038_v18 = vld [vmem:[%s2904_s30] sm:$0xff] }
 0x123   : > { %v2251_v23 = vpop.f32.mrf.mxu0 }
 0x124   : > { %v591_v26 = vadd.f32 %v2251_v23, %v2984_v24 }
 0x125   : > { %v582_v25 = vpop.f32.mrf.mxu0 }
 0x126   : > { %v583_v28 = vadd.f32 %v2984_v24, %v582_v25  ;;  %v647_v31 = vmax.f32 %v591_v26, 0.0 }
 0x127   : > { %v2252_v27 = vpop.f32.mrf.mxu0 }
 0x128   : > { %v594_v29 = vadd.f32 %v2252_v27, %v2984_v24  ;;  %v645_v35 = vmax.f32 %v583_v28, 0.0 }
 0x129   : > { %v585_v30 = vpop.f32.mrf.mxu0 }
 0x12a   : > { %v648_v32 = vmax.f32 %v594_v29, 0.0  ;;  %v586_v33 = vadd.f32 %v2984_v24, %v585_v30 }
 0x12b   : > { %v2255_v34 = vpop.f32.mrf.mxu0 }
 0x12c   : > { %v662_v36 = vpack.c.bf16 %v648_v32, %v647_v31  ;;  %v646_v37 = vmax.f32 %v586_v33, 0.0  ;;  %v607_v39 = vadd.f32 %v2255_v34, %v2984_v24 }
 0x12d   : > { %v598_v38 = vpop.f32.mrf.mxu0 }
 0x12e   : > { %2199 = vst [vmem:[%s2991_s7 + $0x8] sm:$0xff] %v662_v36   ;;  %v661_v40 = vpack.c.bf16 %v646_v37, %v645_v35  ;;  %v599_v42 = vadd.f32 %v2984_v24, %v598_v38  ;;  %v651_v45 = vmax.f32 %v607_v39, 0.0 }
 0x12f   : > { %v2256_v41 = vpop.f32.mrf.mxu0 }
 0x130   : > { %v610_v43 = vadd.f32 %v2256_v41, %v2984_v24  ;;  %2163 = vst [vmem:[%s2991_s7] sm:$0xff] %v661_v40   ;;  %2281 = vmatprep.mubr.bf16.mxu1 %v661_v40  ;;  %v649_v49 = vmax.f32 %v599_v42, 0.0 }
 0x131   : > { %v601_v44 = vpop.f32.mrf.mxu0  ;;  %2282 = vmatmul.mubr.bf16.vlgmr.msra.gmra.mxu1 %v662_v36 }
 0x132   : > { %v652_v46 = vmax.f32 %v610_v43, 0.0  ;;  %v602_v47 = vadd.f32 %v2984_v24, %v601_v44 }
 0x133   : > { %v2259_v48 = vpop.f32.mrf.mxu0 }
 0x134   : > { %v664_v50 = vpack.c.bf16 %v652_v46, %v651_v45  ;;  %v650_v51 = vmax.f32 %v602_v47, 0.0  ;;  %v623_v54 = vadd.f32 %v2259_v48, %v2984_v24 }
 0x135   : > { %v614_v52 = vpop.f32.mrf.mxu0 }
 0x136   : > { %2201 = vst [vmem:[%s2991_s7 + $0x18] sm:$0xff] %v664_v50   ;;  %v663_v53 = vpack.c.bf16 %v650_v51, %v649_v49  ;;  %v615_v56 = vadd.f32 %v2984_v24, %v614_v52  ;;  %v655_v59 = vmax.f32 %v623_v54, 0.0 }
 0x137   : > { %v2260_v55 = vpop.f32.mrf.mxu0 }
 0x138   : > { %2200 = vst [vmem:[%s2991_s7 + $0x10] sm:$0xff] %v663_v53   ;;  %v626_v57 = vadd.f32 %v2260_v55, %v2984_v24  ;;  %2285 = vmatprep.mubr.bf16.mxu1 %v663_v53  ;;  %v653_v63 = vmax.f32 %v615_v56, 0.0 }
 0x139   : > { %v617_v58 = vpop.f32.mrf.mxu0  ;;  %2286 = vmatmul.mubr.bf16.gmra.mxu1 %v664_v50 }
 0x13a   : > { %v656_v60 = vmax.f32 %v626_v57, 0.0  ;;  %v618_v61 = vadd.f32 %v2984_v24, %v617_v58 }
 0x13b   : > { %v2263_v62 = vpop.f32.mrf.mxu0 }
 0x13c   : > { %v666_v0 = vpack.c.bf16 %v656_v60, %v655_v59  ;;  %v654_v1 = vmax.f32 %v618_v61, 0.0  ;;  %v639_v4 = vadd.f32 %v2263_v62, %v2984_v24 }
 0x13d   : > { %v630_v2 = vpop.f32.mrf.mxu0 }
 0x13e   : > { %2203 = vst [vmem:[%s2991_s7 + $0x28] sm:$0xff] %v666_v0   ;;  %v665_v3 = vpack.c.bf16 %v654_v1, %v653_v63  ;;  %v631_v6 = vadd.f32 %v2984_v24, %v630_v2  ;;  %v659_v9 = vmax.f32 %v639_v4, 0.0 }
 0x13f   : > { %v2264_v5 = vpop.f32.mrf.mxu0 }
 0x140   : > { %2202 = vst [vmem:[%s2991_s7 + $0x20] sm:$0xff] %v665_v3   ;;  %v642_v7 = vadd.f32 %v2264_v5, %v2984_v24  ;;  %2289 = vmatprep.mubr.bf16.mxu1 %v665_v3  ;;  %v657_v12 = vmax.f32 %v631_v6, 0.0 }
 0x141   : > { %v633_v8 = vpop.f32.mrf.mxu0  ;;  %2290 = vmatmul.mubr.bf16.gmra.mxu1 %v666_v0 }
 0x142   : > { %v660_v10 = vmax.f32 %v642_v7, 0.0  ;;  %v634_v11 = vadd.f32 %v2984_v24, %v633_v8 }
 0x144   : > { %v668_v13 = vpack.c.bf16 %v660_v10, %v659_v9  ;;  %v658_v14 = vmax.f32 %v634_v11, 0.0 }
 0x146   : > { %2205 = vst [vmem:[%s2991_s7 + $0x38] sm:$0xff] %v668_v13   ;;  %v667_v15 = vpack.c.bf16 %v658_v14, %v657_v12  ;;  %v3028_v12 = vld [vmem:[%s3996_s6] ss:$0 sm:$0xff]  ;;  %v3031_v14 = vld [vmem:[%s2904_s30 + $0x10] sm:$0xff] }
 0x147   : > { %4094 = vst [vmem:[#allocation18_spill] sm:$0xff] %v3031_v14  ;;  %vm1404_vm3 = vcmp.ge.f32.partialorder %v3031_v14, 0.0 }
 0x148   : > { %2204 = vst [vmem:[%s2991_s7 + $0x30] sm:$0xff] %v667_v15   ;;  %2293 = vmatprep.mubr.bf16.mxu1 %v667_v15 }
 0x149   : > { %2294 = vmatmul.mubr.bf16.gmra.mxu1 %v668_v13 }
 0x1f1   : > { %v2283_v19 = vpop.f32.mrf.mxu1 }
 0x1f2   : > { %v855_v25 = vadd.f32 %v2283_v19, %v2051_v21 }
 0x1f3   : > { %v846_v20 = vpop.f32.mrf.mxu1 }
 0x1f4   : > { %v847_v23 = vadd.f32 %v2051_v21, %v846_v20  ;;  %v911_v32 = vmax.f32 %v855_v25, 0.0 }
 0x1f5   : > { %v2284_v22 = vpop.f32.mrf.mxu1 }
 0x1f6   : > { %v858_v24 = vadd.f32 %v2284_v22, %v2051_v21  ;;  %v909_v30 = vmax.f32 %v847_v23, 0.0  ;;  %v1117_v23 = vld [vmem:[%s2911_s21] sm:$0xff] }
 0x1f7   : > { %v849_v26 = vpop.f32.mrf.mxu1 }
 0x1f8   : > { %v850_v27 = vadd.f32 %v2051_v21, %v849_v26  ;;  %v912_v28 = vmax.f32 %v858_v24, 0.0  ;;  %v3058_v26 = vld [vmem:[%s2904_s30 + $0x18] sm:$0xff] }
 0x1f9   : > { %v2287_v29 = vpop.f32.mrf.mxu1 }
 0x1fa   : > { %v910_v31 = vmax.f32 %v850_v27, 0.0  ;;  %v926_v35 = vpack.c.bf16 %v912_v28, %v911_v32  ;;  %v871_v39 = vadd.f32 %v2287_v29, %v2051_v21  ;;  %v1397_v29 = vlaneseq }
 0x1fb   : > { %v862_v33 = vpop.f32.mrf.mxu1 }
 0x1fc   : > { %v925_v34 = vpack.c.bf16 %v910_v31, %v909_v30  ;;  %v863_v37 = vadd.f32 %v2051_v21, %v862_v33  ;;  %v915_v46 = vmax.f32 %v871_v39, 0.0 }
 0x1fd   : > { %v2288_v36 = vpop.f32.mrf.mxu1 }
 0x1fe   : > { %v874_v38 = vadd.f32 %v2288_v36, %v2051_v21  ;;  %2313 = vmatprep.mubr.bf16.mxu0 %v925_v34  ;;  %v913_v44 = vmax.f32 %v863_v37, 0.0  ;;  %v1120_v34 = vld [vmem:[%s2911_s21 + $0x18] sm:$0xff]  ;;  %v3073_v36 = vand.u32 127, %v1397_v29 }
 0x1ff   : > { %v865_v40 = vpop.f32.mrf.mxu1  ;;  %2314 = vmatmul.mubr.bf16.vlgmr.msra.gmra.mxu0 %v926_v35 }
 0x200   : > { %v866_v41 = vadd.f32 %v2051_v21, %v865_v40  ;;  %v916_v42 = vmax.f32 %v874_v38, 0.0  ;;  %4099 = vst [vmem:[#allocation23_spill] sm:$0xff] %v3073_v36  ;;  %v3077_v38 = vld [vmem:[%s2904_s30 + $0x8] sm:$0xff]  ;;  %vm1399_vm4 = vcmp.ge.s32.totalorder %v3073_v36, 12  ;;  %vm1400_vm5 = vcmp.lt.s32.totalorder %v3073_v36, 15  ;;  %v1128_v36 = vld [vmem:[%s2911_s21 + $0x58] sm:$0xff] }
 0x201   : > { %v2291_v43 = vpop.f32.mrf.mxu1  ;;  %vm3092_vm7 = vmand %vm1399_vm4, %vm1400_vm5 }
 0x202   : > { %v914_v45 = vmax.f32 %v866_v41, 0.0  ;;  %v928_v49 = vpack.c.bf16 %v916_v42, %v915_v46  ;;  %v887_v53 = vadd.f32 %v2291_v43, %v2051_v21  ;;  %v4018_v42 = vmov 0.0  }
 0x203   : > { %v878_v47 = vpop.f32.mrf.mxu1 }
 0x204   : > { %v927_v48 = vpack.c.bf16 %v914_v45, %v913_v44  ;;  %v879_v51 = vadd.f32 %v2051_v21, %v878_v47  ;;  %v919_v60 = vmax.f32 %v887_v53, 0.0  ;;  %v1118_v45 = vld [vmem:[%s2911_s21 + $0x8] sm:$0xff] }
 0x205   : > { %v2292_v50 = vpop.f32.mrf.mxu1 }
 0x206   : > { %v890_v52 = vadd.f32 %v2292_v50, %v2051_v21  ;;  %2317 = vmatprep.mubr.bf16.mxu0 %v927_v48  ;;  %v917_v58 = vmax.f32 %v879_v51, 0.0 }
 0x207   : > { %v881_v54 = vpop.f32.mrf.mxu1  ;;  %2318 = vmatmul.mubr.bf16.gmra.mxu0 %v928_v49 }
 0x208   : > { %v882_v55 = vadd.f32 %v2051_v21, %v881_v54  ;;  %v920_v56 = vmax.f32 %v890_v52, 0.0  ;;  %v2103_v52 = vsel %vm1404_vm3, 1.0, %v4018_v42 }
 0x209   : > { %v2295_v57 = vpop.f32.mrf.mxu1 }
 0x20a   : > { %v918_v59 = vmax.f32 %v882_v55, 0.0  ;;  %v930_v63 = vpack.c.bf16 %v920_v56, %v919_v60  ;;  %v903_v3 = vadd.f32 %v2295_v57, %v2051_v21  ;;  %v3103_v56 = vld [vmem:[%s2904_s30 + $0x30] sm:$0xff] }
 0x20b   : > { %v894_v61 = vpop.f32.mrf.mxu1 }
 0x20c   : > { %v929_v62 = vpack.c.bf16 %v918_v59, %v917_v58  ;;  %v895_v1 = vadd.f32 %v2051_v21, %v894_v61  ;;  %v923_v9 = vmax.f32 %v903_v3, 0.0  ;;  %v3109_v58 = vld [vmem:[%s2904_s30 + $0x20] sm:$0xff] }
 0x20d   : > { %v2296_v0 = vpop.f32.mrf.mxu1 }
 0x20e   : > { %v906_v2 = vadd.f32 %v2296_v0, %v2051_v21  ;;  %2321 = vmatprep.mubr.bf16.mxu0 %v929_v62  ;;  %v921_v7 = vmax.f32 %v895_v1, 0.0  ;;  %v3125_v0 = vsel %vm3092_vm7, %v2103_v52, 0.0  ;;  %v3210_v52 = vld [vmem:[%s2904_s30 + $0x70] sm:$0xff] }
 0x20f   : > { %v897_v4 = vpop.f32.mrf.mxu1  ;;  %2322 = vmatmul.mubr.bf16.gmra.mxu0 %v930_v63  ;;  %v3121_v63 = vld [vmem:[%s2904_s30 + $0x28] sm:$0xff]  ;;  %4118 = vst [vmem:[#allocation36_spill] sm:$0xff] %v3210_v52 }
 0x210   : > { %v898_v5 = vadd.f32 %v2051_v21, %v897_v4  ;;  %v924_v6 = vmax.f32 %v906_v2, 0.0 }
 0x212   : > { %v922_v8 = vmax.f32 %v898_v5, 0.0  ;;  %v932_v11 = vpack.c.bf16 %v924_v6, %v923_v9  ;;  %v1123_v9 = vld [vmem:[%s2911_s21 + $0x30] sm:$0xff] }
 0x214   : > { %v931_v10 = vpack.c.bf16 %v922_v8, %v921_v7  ;;  %v3245_v7 = vld [vmem:[%s2904_s30 + $0x68] sm:$0xff] }
 0x215   : > { %4122 = vst [vmem:[#allocation40_spill] sm:$0xff] %v3245_v7 }
 0x216   : > { %2325 = vmatprep.mubr.bf16.mxu0 %v931_v10 }
 0x217   : > { %2326 = vmatmul.mubr.bf16.gmra.mxu0 %v932_v11 }
 0x2bf   : > { %v2315_v13 = vpop.f32.mrf.mxu0 }
 0x2c0   : > { %v3034_v15 = vadd.f32 %v2315_v13, %v3028_v12 }
 0x2c1   : > { %v1038_v17 = vpop.f32.mrf.mxu0 }
 0x2c2   : > { %4095 = vst [vmem:[#allocation19_spill] sm:$0xff] %v3034_v15  ;;  %v1135_v19 = vsub.f32 %v3034_v15, %v3031_v14  ;;  %v3043_v20 = vadd.f32 %v3028_v12, %v1038_v17  ;;  %1369 = vrot.lane.b32.xlu1 %v3034_v15, %s2683_s20 }
 0x2c3   : > { %v2316_v21 = vpop.f32.mrf.mxu0 }
 0x2c4   : > { %4096 = vst [vmem:[#allocation20_spill] sm:$0xff] %v3043_v20  ;;  %v3047_v22 = vmul.f32 %v1135_v19, %v1119_v16  ;;  %v1133_v24 = vsub.f32 %v3043_v20, %v3038_v18  ;;  %v3053_v25 = vadd.f32 %v2316_v21, %v3028_v12  ;;  %1365 = vrot.lane.b32.xlu0 %v3043_v20, %s2683_s20  ;;  %v3151_v16 = vld [vmem:[%s2904_s30 + $0x38] sm:$0xff]  ;;  %v1130_v20 = vld [vmem:[%s2911_s21 + $0x68] sm:$0xff] }
 0x2c5   : > { %v1041_v27 = vpop.f32.mrf.mxu0 }
 0x2c6   : > { %4097 = vst [vmem:[#allocation21_spill] sm:$0xff] %v3053_v25  ;;  %v3061_v28 = vadd.f32 %v3028_v12, %v1041_v27  ;;  %1371 = vrot.lane.b32.xlu1 %v3053_v25, %s2683_s20  ;;  %v1167_v30 = vand.u32 2147483647, %v3047_v22  ;;  %v3066_v31 = vmul.f32 %v1133_v24, %v1117_v23  ;;  %v1136_v33 = vsub.f32 %v3053_v25, %v3058_v26  ;;  %v1121_v24 = vld [vmem:[%s2911_s21 + $0x20] sm:$0xff]  ;;  %v1122_v27 = vld [vmem:[%s2911_s21 + $0x28] sm:$0xff] }
 0x2c7   : > { %v2319_v32 = vpop.f32.mrf.mxu0 }
 0x2c8   : > { %4098 = vst [vmem:[#allocation22_spill] sm:$0xff] %v3061_v28  ;;  %1367 = vrot.lane.b32.xlu0 %v3061_v28, %s2683_s20  ;;  %vm1183_vm2 = vcmp.lt.f32.partialorder %v1167_v30, 0.11111111  ;;  %v1165_v37 = vand.u32 2147483647, %v3066_v31  ;;  %v3079_v40 = vmul.f32 %v1136_v33, %v1120_v34  ;;  %v1134_v44 = vsub.f32 %v3061_v28, %v3077_v38 }
 0x2c9   : > { %v1054_v35 = vpop.f32.mrf.mxu0  ;;  %v2071_v43 = vsel %vm1183_vm2, 1.0, %v4018_v42  ;;  %v3090_v49 = vadd.f32 %v2319_v32, %v3028_v12  ;;  %v2087_v60 = vadd.f32 -0.055555556, %v1167_v30  ;;  %v3168_v30 = vld [vmem:[%s2904_s30 + $0x40] sm:$0xff] }
 0x2ca   : > { %vm1181_vm6 = vcmp.lt.f32.partialorder %v1165_v37, 0.11111111  ;;  %v1168_v47 = vand.u32 2147483647, %v3079_v40  ;;  %v1231_v48 = vmul.f32 4.5, %v2071_v43  ;;  %v1279_v53 = vsub.f32 1.0, %v2071_v43 }
 0x2cb   : > { %v2320_v39 = vpop.f32.mrf.mxu0  ;;  %4100 = vst [vmem:[#allocation24_spill] sm:$0xff] %v3090_v49  ;;  %v3098_v54 = vsel %vm1181_vm6, 1.0, %v4018_v42  ;;  %v3100_v55 = vmul.f32 %v1134_v44, %v1118_v45  ;;  %v3106_v57 = vadd.f32 %v3028_v12, %v1054_v35  ;;  %v3129_v3 = vadd.f32 -0.055555556, %v1165_v37  ;;  %v3191_v43 = vld [vmem:[%s2904_s30 + $0x48] sm:$0xff] }
 0x2cc   : > { %vm3111_vm8 = vcmp.lt.f32.partialorder %v1168_v47, 0.11111111  ;;  %v1247_v1 = vmul.f32 %v1231_v48, %v3047_v22  ;;  %v1229_v2 = vmul.f32 4.5, %v3098_v54  ;;  %v1139_v4 = vsub.f32 %v3090_v49, %v3103_v56 }
 0x2cd   : > { %v1057_v41 = vpop.f32.mrf.mxu0  ;;  %4103 = vst [vmem:[#allocation25_spill] sm:$0xff] %v3106_v57  ;;  %1373 = vrot.lane.b32.xlu0 %v3106_v57, %s2683_s20  ;;  %v3133_v6 = vmul.f32 %v2087_v60, %v1279_v53  ;;  %v1166_v8 = vand.u32 2147483647, %v3100_v55  ;;  %v3139_v10 = vadd.f32 %v2320_v39, %v3028_v12  ;;  %v3146_v11 = vsel %vm3111_vm8, 1.0, %v4018_v42  ;;  %v3185_v39 = vld [vmem:[%s2904_s30 + $0x50] sm:$0xff] }
 0x2ce   : > { %v3118_v62 = vadd.f32 %v3028_v12, %v1057_v41  ;;  %v1137_v13 = vsub.f32 %v3106_v57, %v3109_v58  ;;  %v3158_v23 = vadd.f32 -0.055555556, %v1168_v47  ;;  %v3177_v34 = vmul.f32 %v1247_v1, %v3047_v22  ;;  %4112 = vst [vmem:[#allocation32_spill] sm:$0xff] %v3185_v39  ;;  %v3188_v41 = vld [vmem:[%s2904_s30 + $0x58] sm:$0xff]  ;;  %v1131_v57 = vld [vmem:[%s2911_s21 + $0x70] sm:$0xff] }
 0x2cf   : > { %v2323_v46 = vpop.f32.mrf.mxu0  ;;  %4107 = vst [vmem:[#allocation27_spill] sm:$0xff] %v3139_v10  ;;  %v3180_v35 = vmul.f32 %v1229_v2, %v3066_v31  ;;  %v3182_v37 = vmul.f32 %v1139_v4, %v1123_v9  ;;  %4113 = vst [vmem:[#allocation33_spill] sm:$0xff] %v3188_v41  ;;  %v1232_v22 = vmul.f32 4.5, %v3146_v11  ;;  %vm3198_vm9 = vcmp.lt.f32.partialorder %v1166_v8, 0.11111111  ;;  %v1125_v9 = vld [vmem:[%s2911_s21 + $0x40] sm:$0xff] }
 0x2d0   : > { %4106 = vst [vmem:[#allocation26_spill] sm:$0xff] %v3118_v62  ;;  %1375 = vrot.lane.b32.xlu1 %v3118_v62, %s2683_s20  ;;  %v1138_v17 = vsub.f32 %v3118_v62, %v3121_v63  ;;  %v3163_v29 = vadd.f32 %v2323_v46, %v3028_v12  ;;  %v1140_v48 = vsub.f32 %v3139_v10, %v3151_v16  ;;  %v3222_v4 = vadd.f32 -0.055555556, %v1166_v8  ;;  %v1129_v62 = vld [vmem:[%s2911_s21 + $0x60] sm:$0xff] }
 0x2d1   : > { %v1070_v50 = vpop.f32.mrf.mxu0  ;;  %1377 = vrot.lane.b32.xlu0 %v3090_v49, %s2683_s20  ;;  %v3212_v53 = vmul.f32 %v1137_v13, %v1121_v24  ;;  %v1127_v24 = vld [vmem:[%s2911_s21 + $0x50] sm:$0xff]  ;;  %v2070_v8 = vsel %vm3198_vm9, 1.0, %v4018_v42  ;;  %v1248_v49 = vmul.f32 %v1232_v22, %v3079_v40  ;;  %v1132_v22 = vld [vmem:[%s2911_s21 + $0x78] sm:$0xff]  ;;  %vm1402_vm6 = vcmp.ge.f32.partialorder %v3038_v18, 0.0 }
 0x2d2   : > { %v3156_v19 = vadd.f32 %v3028_v12, %v1070_v50  ;;  %4109 = vst [vmem:[#allocation29_spill] sm:$0xff] %v3163_v29  ;;  %v3207_v50 = vld [vmem:[%s2904_s30 + $0x60] sm:$0xff]  ;;  %v3215_v60 = vmul.f32 %v1138_v17, %v1122_v27  ;;  %v1126_v27 = vld [vmem:[%s2911_s21 + $0x48] sm:$0xff]  ;;  %v1230_v28 = vmul.f32 4.5, %v2070_v8  ;;  %vm1405_vm8 = vcmp.ge.f32.partialorder %v3058_v26, 0.0 }
 0x2d3   : > { %v2324_v59 = vpop.f32.mrf.mxu0  ;;  %4117 = vst [vmem:[#allocation35_spill] sm:$0xff] %v3207_v50  ;;  %vm1403_vm9 = vcmp.ge.f32.partialorder %v3077_v38, 0.0 }
 0x2d4   : > { %4108 = vst [vmem:[#allocation28_spill] sm:$0xff] %v3156_v19  ;;  %v3171_v32 = vadd.f32 %v2324_v59, %v3028_v12  ;;  %1379 = vrot.lane.b32.xlu1 %v3139_v10, %s2683_s20  ;;  %v1124_v59 = vld [vmem:[%s2911_s21 + $0x38] sm:$0xff]  ;;  %v1141_v61 = vsub.f32 %v3156_v19, %v3168_v30  ;;  %s2158_s21 = sshll.u32 %s2765_s17, 10 }
 0x2d5   : > { %v1073_v5 = vpop.f32.mrf.mxu0  ;;  %1381 = vrot.lane.b32.xlu0 %v3156_v19, %s2683_s20  ;;  %v3254_v42 = vmul.f32 %v1140_v48, %v1124_v59  ;;  %s3926_s26 = scalar_lea.hbm %s3999_s9, %s2158_s21 }
 0x2d6   : > { %4110 = vst [vmem:[#allocation30_spill] sm:$0xff] %v3171_v32  ;;  %v3174_v33 = vadd.f32 %v3028_v12, %v1073_v5  ;;  %v1143_v5 = vsub.f32 %v3163_v29, %v3185_v39  ;;  %v1144_v13 = vsub.f32 %v3171_v32, %v3188_v41  ;;  %v3265_v25 = vmul.f32 %v1141_v61, %v1125_v9 }
 0x2d7   : > { %v2327_v21 = vpop.f32.mrf.mxu0  ;;  %v1278_v61 = vsub.f32 1.0, %v2070_v8 }
 0x2d8   : > { %4111 = vst [vmem:[#allocation31_spill] sm:$0xff] %v3174_v33  ;;  %v3194_v44 = vadd.f32 %v2327_v21, %v3028_v12  ;;  %v1142_v17 = vsub.f32 %v3174_v33, %v3191_v43  ;;  %v3234_v21 = vld [vmem:[%s2904_s30 + $0x78] sm:$0xff]  ;;  %1383 = vrot.lane.b32.xlu1 %v3174_v33, %s2683_s20  ;;  %v3279_v14 = vmul.f32 %v1144_v13, %v1128_v36  ;;  %v4124_v33 = vand.u32 2147483647, %v3182_v37 }
 0x2d9   : > { %v1086_v45 = vpop.f32.mrf.mxu0  ;;  %4120 = vst [vmem:[#allocation38_spill] sm:$0xff] %v3234_v21  ;;  %1385 = vrot.lane.b32.xlu0 %v3163_v29, %s2683_s20 }
 0x2da   : > { %4114 = vst [vmem:[#allocation34_spill] sm:$0xff] %v3194_v44  ;;  %v3220_v1 = vadd.f32 %v3028_v12, %v1086_v45  ;;  %v1147_v10 = vsub.f32 %v3194_v44, %v3210_v52  ;;  %v3271_v59 = vmul.f32 %v1142_v17, %v1126_v27  ;;  %vm3287_vm10 = vcmp.lt.f32.partialorder %v4124_v33, 0.11111111 }
 0x2db   : > { %v2328_v2 = vpop.f32.mrf.mxu0  ;;  %v4040_v27 = vand.u32 2147483647, %v3254_v42  ;;  %v4131_v33 = vand.u32 2147483647, %v3215_v60  ;;  %v4036_v8 = vand.u32 2147483647, %v3279_v14 }
 0x2dc   : > { %4119 = vst [vmem:[#allocation37_spill] sm:$0xff] %v3220_v1  ;;  %v3242_v45 = vadd.f32 %v2328_v2, %v3028_v12  ;;  %v1145_v19 = vsub.f32 %v3220_v1, %v3207_v50  ;;  %v3283_v47 = vmul.f32 %v1147_v10, %v1131_v57  ;;  %1387 = vrot.lane.b32.xlu1 %v3171_v32, %s2683_s20  ;;  %v4128_v10 = vand.u32 2147483647, %v3212_v53 }
 0x2dd   : > { %v1089_v46 = vpop.f32.mrf.mxu0  ;;  %vm3309_vm12 = vcmp.lt.f32.partialorder %v4131_v33, 0.11111111  ;;  %1389 = vrot.lane.b32.xlu0 %v3220_v1, %s2683_s20  ;;  %vm3348_vm13 = vcmp.lt.f32.partialorder %v4040_v27, 0.11111111  ;;  %vm1192_vm1 = vcmp.lt.f32.partialorder %v4036_v8, 0.11111111 }
 0x2de   : > { %4121 = vst [vmem:[#allocation39_spill] sm:$0xff] %v3242_v45  ;;  %v3259_v2 = vadd.f32 %v3028_v12, %v1089_v46  ;;  %v1148_v48 = vsub.f32 %v3242_v45, %v3234_v21  ;;  %v3277_v46 = vmul.f32 %v1143_v5, %v1127_v24  ;;  %v3281_v9 = vmul.f32 %v1145_v19, %v1129_v62 }
 0x2df   : > { %v4127_v62 = vsub.f32 1.0, %v3098_v54  ;;  %vm3303_vm11 = vcmp.lt.f32.partialorder %v4128_v10, 0.11111111  ;;  %v3316_v24 = vadd.f32 %v3133_v6, %v3177_v34  ;;  %v4038_v54 = vand.u32 2147483647, %v3271_v59 }
 0x2e0   : > { %4123 = vst [vmem:[#allocation41_spill] sm:$0xff] %v3259_v2  ;;  %v1146_v12 = vsub.f32 %v3259_v2, %v3245_v7  ;;  %v3296_v36 = vmul.f32 %v1148_v48, %v1132_v22  ;;  %v1246_v22 = vmul.f32 %v1230_v28, %v3100_v55  ;;  %v4034_v48 = vand.u32 2147483647, %v3281_v9  ;;  %1391 = vrot.lane.b32.xlu1 %v3259_v2, %s2683_s20 }
 0x2e1   : > { %v1309_v57 = vmul.f32 %v3129_v3, %v4127_v62  ;;  %v4037_v3 = vand.u32 2147483647, %v3277_v46  ;;  %v4033_v62 = vand.u32 2147483647, %v3283_v47  ;;  %v1261_v6 = vmul.f32 %v3180_v35, %v3066_v31  ;;  %1393 = vrot.lane.b32.xlu0 %v3194_v44, %s2683_s20 }
 0x2e2   : > { %v3294_v5 = vmul.f32 %v1146_v12, %v1130_v20  ;;  %v4039_v20 = vand.u32 2147483647, %v3265_v25  ;;  %v1264_v34 = vmul.f32 %v1248_v49, %v3079_v40  ;;  %v4134_v10 = vmov 0.0  }
 0x2e3   : > { %v3333_v33 = vsel %vm3287_vm10, 1.0, %v4134_v10  ;;  %v4035_v28 = vand.u32 2147483647, %v3296_v36  ;;  %v2073_v12 = vsel %vm3303_vm11, 1.0, %v4134_v10  ;;  %v3344_v31 = vsel %vm3309_vm12, 1.0, %v4134_v10 }
 0x2e4   : > { %vm3354_vm14 = vcmp.lt.f32.partialorder %v4039_v20, 0.11111111  ;;  %v1310_v35 = vmul.f32 %v3222_v4, %v1278_v61  ;;  %vm1190_vm15 = vcmp.lt.f32.partialorder %v4038_v54, 0.11111111  ;;  %vm1191_vm0 = vcmp.lt.f32.partialorder %v4037_v3, 0.11111111  ;;  %1395 = vrot.lane.b32.xlu1 %v3242_v45, %s2683_s20 }
 0x2e5   : > { %v1262_v17 = vmul.f32 %v1246_v22, %v3100_v55  ;;  %vm1193_vm2 = vcmp.lt.f32.partialorder %v4034_v48, 0.11111111  ;;  %v4139_v19 = vand.u32 2147483647, %v3294_v5  ;;  %vm1195_vm4 = vcmp.lt.f32.partialorder %v4033_v62, 0.11111111 }
 0x2e6   : > { %v1235_v4 = vmul.f32 4.5, %v3333_v33  ;;  %v1233_v61 = vmul.f32 4.5, %v2073_v12  ;;  %v1234_v13 = vmul.f32 4.5, %v3344_v31  ;;  %vm1196_vm5 = vcmp.lt.f32.partialorder %v4035_v28, 0.11111111 }
 0x2e7   : > { %vm1194_vm3 = vcmp.lt.f32.partialorder %v4139_v19, 0.11111111  ;;  %v3383_v55 = vsel %vm3348_vm13, 1.0, %v4134_v10  ;;  %v3388_v22 = vsel %vm3354_vm14, 1.0, %v4134_v10  ;;  %v3391_v19 = vsel %vm1190_vm15, 1.0, %v4134_v10 }
 0x2e8   : > { %v3394_v62 = vsel %vm1191_vm0, 1.0, %v4134_v10  ;;  %v3397_v48 = vsel %vm1192_vm1, 1.0, %v4134_v10  ;;  %v3400_v28 = vsel %vm1193_vm2, 1.0, %v4134_v10  ;;  %v3403_v40 = vsel %vm1194_vm3, 1.0, %v4134_v10 }
 0x2e9   : > { %v3406_v8 = vsel %vm1195_vm4, 1.0, %v4134_v10  ;;  %v1325_v49 = vadd.f32 %v1309_v57, %v1261_v6  ;;  %v4140_v3 = vsub.f32 1.0, %v3146_v11  ;;  %v1326_v20 = vadd.f32 %v1310_v35, %v1262_v17 }
 0x2ea   : > { %v3412_v27 = vsel %vm1196_vm5, 1.0, %v4134_v10  ;;  %v1236_v45 = vmul.f32 4.5, %v3383_v55  ;;  %v1237_v44 = vmul.f32 4.5, %v3388_v22  ;;  %v1238_v2 = vmul.f32 4.5, %v3391_v19 }
 0x2eb   : > { %v1312_v54 = vmul.f32 %v3158_v23, %v4140_v3  ;;  %v1239_v1 = vmul.f32 4.5, %v3394_v62  ;;  %v1240_v32 = vmul.f32 4.5, %v3397_v48  ;;  %v1241_v57 = vmul.f32 4.5, %v3400_v28 }
 0x2ec   : > { %v1242_v11 = vmul.f32 4.5, %v3403_v40  ;;  %v1243_v23 = vmul.f32 4.5, %v3406_v8  ;;  %v1251_v6 = vmul.f32 %v1235_v4, %v3182_v37  ;;  %v1249_v35 = vmul.f32 %v1233_v61, %v3212_v53 }
 0x2ed   : > { %v1328_v3 = vadd.f32 %v1312_v54, %v1264_v34  ;;  %v1250_v17 = vmul.f32 %v1234_v13, %v3215_v60  ;;  %v1341_v29 = vadd.f32 %v1326_v20, %v1325_v49  ;;  %v1281_v15 = vsub.f32 1.0, %v2073_v12 }
 0x2ee   : > { %v4141_v21 = vand.u32 2147483647, %v3212_v53  ;;  %v1244_v7 = vmul.f32 4.5, %v3412_v27  ;;  %v1252_v50 = vmul.f32 %v1236_v45, %v3254_v42  ;;  %v1253_v41 = vmul.f32 %v1237_v44, %v3265_v25 }
 0x2ef   : > { %v1254_v39 = vmul.f32 %v1238_v2, %v3271_v59  ;;  %v1255_v54 = vmul.f32 %v1239_v1, %v3277_v46  ;;  %v1256_v34 = vmul.f32 %v1240_v32, %v3279_v14  ;;  %v1257_v4 = vmul.f32 %v1241_v57, %v3281_v9 }
 0x2f0   : > { %v2089_v52 = vadd.f32 -0.055555556, %v4141_v21  ;;  %v1258_v20 = vmul.f32 %v1242_v11, %v3294_v5  ;;  %v1259_v12 = vmul.f32 %v1243_v23, %v3283_v47  ;;  %v1265_v21 = vmul.f32 %v1249_v35, %v3212_v53 }
 0x2f1   : > { %v1266_v61 = vmul.f32 %v1250_v17, %v3215_v60  ;;  %v4142_v45 = vand.u32 2147483647, %v3215_v60  ;;  %v1282_v44 = vsub.f32 1.0, %v3344_v31  ;;  %v3442_v2 = vmul.f32 %v1244_v7, %v3296_v36 }
 0x2f2   : > { %v1267_v32 = vmul.f32 %v1251_v6, %v3182_v37  ;;  %v1313_v1 = vmul.f32 %v2089_v52, %v1281_v15  ;;  %v1342_v49 = vadd.f32 %v1341_v29, %v3316_v24  ;;  %v1268_v57 = vmul.f32 %v1252_v50, %v3254_v42 }
 0x2f3   : > { %v2090_v13 = vadd.f32 -0.055555556, %v4142_v45  ;;  %v1269_v11 = vmul.f32 %v1253_v41, %v3265_v25  ;;  %v1270_v53 = vmul.f32 %v1254_v39, %v3271_v59  ;;  %v1271_v23 = vmul.f32 %v1255_v54, %v3277_v46 }
 0x2f4   : > { %v3451_v60 = vmul.f32 %v1256_v34, %v3279_v14  ;;  %v3454_v31 = vmul.f32 %v1257_v4, %v3281_v9  ;;  %v3457_v7 = vmul.f32 %v1258_v20, %v3294_v5  ;;  %v3460_v15 = vmul.f32 %v1259_v12, %v3283_v47 }
 0x2f5   : > { %v1283_v29 = vsub.f32 1.0, %v3333_v33  ;;  %v1284_v41 = vsub.f32 1.0, %v3383_v55  ;;  %v1285_v39 = vsub.f32 1.0, %v3388_v22  ;;  %v1314_v50 = vmul.f32 %v2090_v13, %v1282_v44 }
 0x2f6   : > { %v1286_v52 = vsub.f32 1.0, %v3391_v19  ;;  %v1287_v24 = vsub.f32 1.0, %v3394_v62  ;;  %v4143_v6 = vand.u32 2147483647, %v3182_v37  ;;  %v4144_v17 = vand.u32 2147483647, %v3254_v42 }
 0x2f7   : > { %v1329_v34 = vadd.f32 %v1313_v1, %v1265_v21  ;;  %v1330_v4 = vadd.f32 %v1314_v50, %v1266_v61  ;;  %v1343_v20 = vadd.f32 %v1342_v49, %v1328_v3  ;;  %v1288_v33 = vsub.f32 1.0, %v3397_v48 }
 0x2f8   : > { %v2091_v35 = vadd.f32 -0.055555556, %v4143_v6  ;;  %v2092_v54 = vadd.f32 -0.055555556, %v4144_v17  ;;  %v1289_v55 = vsub.f32 1.0, %v3400_v28  ;;  %v2101_v42 = vsel %vm1402_vm6, 1.0, %v4134_v10 }
 0x2f9   : > { %v4145_v22 = vand.u32 2147483647, %v3265_v25  ;;  %v4146_v62 = vand.u32 2147483647, %v3271_v59  ;;  %v1344_v13 = vadd.f32 %v1343_v20, %v1329_v34  ;;  %vm1406_vm10 = vcmp.ge.f32.partialorder %v3109_v58, 0.0 }
 0x2fa   : > { %v1315_v37 = vmul.f32 %v2091_v35, %v1283_v29  ;;  %v1316_v45 = vmul.f32 %v2092_v54, %v1284_v41  ;;  %v2102_v25 = vsel %vm1403_vm9, 1.0, %v4134_v10  ;;  %v3485_v59 = vsel %vm3092_vm7, %v2101_v42, 0.0 }
 0x2fb   : > { %v2093_v19 = vadd.f32 -0.055555556, %v4145_v22  ;;  %v2094_v12 = vadd.f32 -0.055555556, %v4146_v62  ;;  %v1345_v3 = vadd.f32 %v1344_v13, %v1330_v4  ;;  %v3489_v44 = vsel %vm3092_vm7, %v2102_v25, 0.0 }
 0x2fc   : > { %v1331_v28 = vadd.f32 %v1315_v37, %v1267_v32  ;;  %v1332_v61 = vadd.f32 %v1316_v45, %v1268_v57  ;;  %vm1407_vm11 = vcmp.ge.f32.partialorder %v3121_v63, 0.0  ;;  %v2104_v49 = vsel %vm1405_vm8, 1.0, %v4134_v10 }
 0x2fd   : > { %v1317_v21 = vmul.f32 %v2093_v19, %v1285_v39  ;;  %v1318_v48 = vmul.f32 %v2094_v12, %v1286_v52  ;;  %v1794_v32 = vadd.f32 %v3489_v44, %v3485_v59  ;;  %v2105_v29 = vsel %vm1406_vm10, 1.0, %v4134_v10 }
 0x2fe   : > { %v1346_v1 = vadd.f32 %v1345_v3, %v1331_v28  ;;  %v1290_v57 = vsub.f32 1.0, %v3403_v40  ;;  %v4147_v41 = vand.u32 2147483647, %v3277_v46  ;;  %vm1408_vm12 = vcmp.ge.f32.partialorder %v3103_v56, 0.0 }
 0x2ff   : > { %v1333_v50 = vadd.f32 %v1317_v21, %v1269_v11  ;;  %v1334_v52 = vadd.f32 %v1318_v48, %v1270_v53  ;;  %v1795_v35 = vadd.f32 %v1794_v32, %v3125_v0  ;;  %v2106_v17 = vsel %vm1407_vm11, 1.0, %v4134_v10 }
 0x300   : > { %v2095_v39 = vadd.f32 -0.055555556, %v4147_v41  ;;  %v1347_v6 = vadd.f32 %v1346_v1, %v1332_v61  ;;  %v4148_v54 = vand.u32 2147483647, %v3279_v14  ;;  %v3506_v4 = vsel %vm3092_vm7, %v2104_v49, 0.0 }
 0x301   : > { %v3510_v46 = vsel %vm3092_vm7, %v2105_v29, 0.0  ;;  %vm1409_vm13 = vcmp.ge.f32.partialorder %v3151_v16, 0.0  ;;  %v1796_v53 = vadd.f32 %v1795_v35, %v3506_v4  ;;  %v2107_v20 = vsel %vm1408_vm12, 1.0, %v4134_v10 }
 0x302   : > { %v2096_v34 = vadd.f32 -0.055555556, %v4148_v54  ;;  %v1319_v40 = vmul.f32 %v2095_v39, %v1287_v24  ;;  %v1348_v11 = vadd.f32 %v1347_v6, %v1333_v50  ;;  %v4149_v22 = vand.u32 2147483647, %v3281_v9  ;;  %v4157_v50 = vld [vmem:[#allocation32_spill] sm:$0xff] }
 0x303   : > { %v4150_v19 = vand.u32 2147483647, %v3294_v5  ;;  %v3521_v37 = vsel %vm3092_vm7, %v2106_v17, 0.0  ;;  %v1797_v24 = vadd.f32 %v1796_v53, %v3510_v46  ;;  %v2108_v42 = vsel %vm1409_vm13, 1.0, %v4134_v10 }
 0x304   : > { %v2097_v14 = vadd.f32 -0.055555556, %v4149_v22  ;;  %v1320_v12 = vmul.f32 %v2096_v34, %v1288_v33  ;;  %4151 = vst [vmem:[#allocation42_spill] sm:$0xff] %v3521_v37  ;;  %v1335_v45 = vadd.f32 %v1319_v40, %v1271_v23  ;;  %v1349_v13 = vadd.f32 %v1348_v11, %v1334_v52  ;;  %v4158_v34 = vld [vmem:[#allocation33_spill] sm:$0xff]  ;;  %v4160_v11 = vld [vmem:[#allocation35_spill] sm:$0xff]  ;;  %v4162_v22 = vld [vmem:[#allocation40_spill] sm:$0xff] }
 0x305   : > { %v2098_v62 = vadd.f32 -0.055555556, %v4150_v19  ;;  %v1291_v21 = vsub.f32 1.0, %v3406_v8  ;;  %v3528_v9 = vsel %vm3092_vm7, %v2107_v20, 0.0  ;;  %vm1410_vm14 = vcmp.ge.f32.partialorder %v3168_v30, 0.0 }
 0x306   : > { %v1321_v48 = vmul.f32 %v2097_v14, %v1289_v55  ;;  %4152 = vst [vmem:[#allocation43_spill] sm:$0xff] %v3528_v9  ;;  %v1336_v33 = vadd.f32 %v1320_v12, %v3451_v60  ;;  %v1350_v28 = vadd.f32 %v1349_v13, %v1335_v45  ;;  %v1798_v23 = vadd.f32 %v1797_v24, %v3521_v37  ;;  %v4165_v24 = vld [vmem:[#allocation38_spill] sm:$0xff] }
 0x307   : > { %v1322_v5 = vmul.f32 %v2098_v62, %v1290_v57  ;;  %v1292_v3 = vsub.f32 1.0, %v3412_v27  ;;  %v4153_v25 = vand.u32 2147483647, %v3283_v47  ;;  %v3539_v55 = vsel %vm3092_vm7, %v2108_v42, 0.0  ;;  %v4163_v62 = vld [vmem:[#allocation36_spill] sm:$0xff] }
 0x308   : > { %v1337_v8 = vadd.f32 %v1321_v48, %v3454_v31  ;;  %4154 = vst [vmem:[#allocation44_spill] sm:$0xff] %v3539_v55  ;;  %v1351_v49 = vadd.f32 %v1350_v28, %v1336_v33  ;;  %v1799_v32 = vadd.f32 %v1798_v23, %v3528_v9  ;;  %v2109_v60 = vsel %vm1410_vm14, 1.0, %v4134_v10 }
 0x309   : > { %v2099_v61 = vadd.f32 -0.055555556, %v4153_v25  ;;  %v1338_v1 = vadd.f32 %v1322_v5, %v3457_v7  ;;  %v1276_v29 = vmul.f32 %v3442_v2, %v3296_v36  ;;  %v4155_v27 = vand.u32 2147483647, %v3296_v36 }
 0x30a   : > { %vm1411_vm15 = vcmp.ge.f32.partialorder %v3191_v43, 0.0  ;;  %v1352_v57 = vadd.f32 %v1351_v49, %v1337_v8  ;;  %v1800_v41 = vadd.f32 %v1799_v32, %v3539_v55  ;;  %v3552_v7 = vsel %vm3092_vm7, %v2109_v60, 0.0  ;;  %v4170_v49 = vld [vmem:[#allocation19_spill] sm:$0xff] }
 0x30b   : > { %v2100_v47 = vadd.f32 -0.055555556, %v4155_v27  ;;  %v1323_v31 = vmul.f32 %v2099_v61, %v1291_v21  ;;  %4156 = vst [vmem:[#allocation45_spill] sm:$0xff] %v3552_v7  ;;  %vm1412_vm0 = vcmp.ge.f32.partialorder %v4157_v50, 0.0  ;;  %v2110_v2 = vsel %vm1411_vm15, 1.0, %v4134_v10  ;;  %v4171_v27 = vld [vmem:[#allocation20_spill] sm:$0xff] }
 0x30c   : > { %v1353_v6 = vadd.f32 %v1352_v57, %v1338_v1  ;;  %v1801_v17 = vadd.f32 %v1800_v41, %v3552_v7  ;;  %v2111_v54 = vsel %vm1412_vm0, 1.0, %v4134_v10  ;;  %vm1413_vm1 = vcmp.ge.f32.partialorder %v4158_v34, 0.0 }
 0x30d   : > { %v1324_v39 = vmul.f32 %v2100_v47, %v1292_v3  ;;  %v1339_v52 = vadd.f32 %v1323_v31, %v3460_v15  ;;  %v3562_v40 = vsel %vm3092_vm7, %v2110_v2, 0.0  ;;  %vm1414_vm2 = vcmp.ge.f32.partialorder %v4160_v11, 0.0 }
 0x30e   : > { %4159 = vst [vmem:[#allocation32_spill] sm:$0xff] %v3562_v40  ;;  %v2112_v15 = vsel %vm1413_vm1, 1.0, %v4134_v10  ;;  %v3568_v20 = vsel %vm3092_vm7, %v2111_v54, 0.0  ;;  %vm1415_vm3 = vcmp.ge.f32.partialorder %v4162_v22, 0.0  ;;  %v2113_v14 = vsel %vm1414_vm2, 1.0, %v4134_v10 }
 0x30f   : > { %v1340_v36 = vadd.f32 %v1324_v39, %v1276_v29  ;;  %v1354_v35 = vadd.f32 %v1353_v6, %v1339_v52  ;;  %4161 = vst [vmem:[#allocation33_spill] sm:$0xff] %v3568_v20  ;;  %v1802_v19 = vadd.f32 %v1801_v17, %v3562_v40  ;;  %vm1416_vm4 = vcmp.ge.f32.partialorder %v4163_v62, 0.0  ;;  %v4172_v6 = vld [vmem:[#allocation21_spill] sm:$0xff]  ;;  %v4173_v17 = vld [vmem:[#allocation22_spill] sm:$0xff] }
 0x310   : > { %v3576_v12 = vsel %vm3092_vm7, %v2112_v15, 0.0  ;;  %v2114_v45 = vsel %vm1415_vm3, 1.0, %v4134_v10  ;;  %vm1417_vm5 = vcmp.ge.f32.partialorder %v4165_v24, 0.0  ;;  %v3583_v42 = vsel %vm3092_vm7, %v2113_v14, 0.0 }
 0x311   : > { %v1355_v53 = vadd.f32 %v1354_v35, %v1340_v36  ;;  %4164 = vst [vmem:[#allocation35_spill] sm:$0xff] %v3576_v12  ;;  %v1803_v13 = vadd.f32 %v1802_v19, %v3568_v20  ;;  %4166 = vst [vmem:[#allocation40_spill] sm:$0xff] %v3583_v42  ;;  %v2115_v21 = vsel %vm1416_vm4, 1.0, %v4134_v10  ;;  %v3589_v5 = vsel %vm3092_vm7, %v2114_v45, 0.0 }
 0x312   : > { %4167 = vst [vmem:[#allocation36_spill] sm:$0xff] %v3589_v5  ;;  %v2116_v33 = vsel %vm1417_vm5, 1.0, %v4134_v10  ;;  %v3595_v23 = vsel %vm3092_vm7, %v2115_v21, 0.0  ;;  %vm1466_vm6 = vcmp.eq.f32.partialorder %v3038_v18, 1.0  ;;  %vm1469_vm8 = vcmp.eq.f32.partialorder %v3058_v26, 1.0  ;;  %v4175_v21 = vld [vmem:[#allocation25_spill] sm:$0xff] }
 0x313   : > { %1356 = vadd.xlane.f32.xlu0 %v1355_v53  ;;  %v1804_v48 = vadd.f32 %v1803_v13, %v3576_v12  ;;  %4168 = vst [vmem:[#allocation38_spill] sm:$0xff] %v3595_v23  ;;  %v3600_v25 = vsel %vm3092_vm7, %v2116_v33, 0.0  ;;  %v4174_v13 = vld [vmem:[#allocation18_spill] sm:$0xff]  ;;  %vm1467_vm9 = vcmp.eq.f32.partialorder %v3077_v38, 1.0  ;;  %vm1470_vm10 = vcmp.eq.f32.partialorder %v3109_v58, 1.0 }
 0x314   : > { %4169 = vst [vmem:[#allocation46_spill] sm:$0xff] %v3600_v25  ;;  %vm1468_vm7 = vcmp.eq.f32.partialorder %v4174_v13, 1.0  ;;  %v4176_v38 = vld [vmem:[#allocation26_spill] sm:$0xff]  ;;  %v3669_v58 = vsel %vm1466_vm6, 1.0, %v4134_v10  ;;  %vm1471_vm11 = vcmp.eq.f32.partialorder %v3121_v63, 1.0  ;;  %vm1472_vm12 = vcmp.eq.f32.partialorder %v3103_v56, 1.0 }
 0x315   : > { %v1805_v28 = vadd.f32 %v1804_v48, %v3583_v42  ;;  %vm1473_vm13 = vcmp.eq.f32.partialorder %v3151_v16, 1.0  ;;  %v3719_v63 = vsel %vm1472_vm12, 1.0, %v4134_v10  ;;  %vm1474_vm14 = vcmp.eq.f32.partialorder %v3168_v30, 1.0  ;;  %v4182_v16 = vld [vmem:[#allocation31_spill] sm:$0xff] }
 0x316   : > { %vm1475_vm15 = vcmp.eq.f32.partialorder %v3191_v43, 1.0  ;;  %vm1476_vm0 = vcmp.eq.f32.partialorder %v4157_v50, 1.0 }
 0x317   : > { %v1806_v3 = vadd.f32 %v1805_v28, %v3589_v5 }
 0x319   : > { %v1807_v61 = vadd.f32 %v1806_v3, %v3595_v23 }
 0x31b   : > { %v1808_v8 = vadd.f32 %v1807_v61, %v3600_v25  ;;  %v3658_v61 = vsel %vm1468_vm7, 1.0, %v4134_v10 }
 0x31d   : > { %1809 = vadd.xlane.f32.xlu0 %v1808_v8 }
 0x334   : > { %v3604_v1 = vpop.permute.xlu1 %1369 }
 0x335   : > { %v3608_v32 = vmax.f32 %v4170_v49, %v3604_v1  ;;  %v1692_v56 = vsub.f32 %v3604_v1, %v4170_v49 }
 0x336   : > { %v3610_v60 = vpop.permute.xlu0 %1365 }
 0x337   : > { %v1532_v29 = vsub.f32 %v4170_v49, %v3608_v32  ;;  %v1580_v51 = vsub.f32 %v3604_v1, %v3608_v32  ;;  %v3618_v47 = vmax.f32 %v4171_v27, %v3610_v60  ;;  %v1690_v1 = vsub.f32 %v3610_v60, %v4171_v27 }
 0x338   : > { %v3620_v31 = vpop.permute.xlu1 %1371  ;;  %v1708_v30 = vmul.f32 %v3658_v61, %v1692_v56 }
 0x339   : > { %v1550_v57 = vmul.f32 1.442695, %v1532_v29  ;;  %v1598_v41 = vmul.f32 1.442695, %v1580_v51  ;;  %v1530_v39 = vsub.f32 %v4171_v27, %v3618_v47  ;;  %v1578_v52 = vsub.f32 %v3610_v60, %v3618_v47 }
 0x33a   : > { %v3628_v2 = vmax.f32 %v4172_v6, %v3620_v31  ;;  %v3630_v36 = vpop.permute.xlu0 %1367 }
 0x33b   : > { %2422 = vpow2.f32 %v1550_v57  ;;  %v1546_v35 = vmul.f32 1.442695, %v1530_v39  ;;  %v3634_v54 = vmax.f32 %v4173_v17, %v3630_v36  ;;  %v1594_v34 = vmul.f32 1.442695, %v1578_v52 }
 0x33c   : > { %2424 = vpow2.f32 %v1598_v41  ;;  %v1533_v11 = vsub.f32 %v4172_v6, %v3628_v2  ;;  %v1581_v53 = vsub.f32 %v3620_v31, %v3628_v2  ;;  %v3672_v57 = vsel %vm1469_vm8, 1.0, %v4134_v10 }
 0x33d   : > { %2426 = vpow2.f32 %v1546_v35  ;;  %v1531_v15 = vsub.f32 %v4173_v17, %v3634_v54  ;;  %v1579_v14 = vsub.f32 %v3630_v36, %v3634_v54  ;;  %v3675_v41 = vsel %vm1467_vm9, 1.0, %v4134_v10 }
 0x33e   : > { %2428 = vpow2.f32 %v1594_v34  ;;  %v1552_v22 = vmul.f32 1.442695, %v1533_v11  ;;  %v1600_v19 = vmul.f32 1.442695, %v1581_v53  ;;  %v3680_v35 = vsel %vm1470_vm10, 1.0, %v4134_v10 }
 0x33f   : > { %v1548_v62 = vmul.f32 1.442695, %v1531_v15  ;;  %v1596_v45 = vmul.f32 1.442695, %v1579_v14  ;;  %v3645_v24 = vpop.permute.xlu0 %1373  ;;  %v1691_v55 = vsub.f32 %v3630_v36, %v4173_v17 }
 0x340   : > { %2430 = vpow2.f32 %v1552_v22  ;;  %v3652_v48 = vmax.f32 %v4175_v21, %v3645_v24 }
 0x341   : > { %2432 = vpow2.f32 %v1600_v19 }
 0x342   : > { %2434 = vpow2.f32 %v1548_v62  ;;  %v3655_v28 = vpop.permute.xlu1 %1375  ;;  %v1534_v18 = vsub.f32 %v4175_v21, %v3652_v48  ;;  %v1582_v26 = vsub.f32 %v3645_v24, %v3652_v48 }
 0x343   : > { %2436 = vpow2.f32 %v1596_v45  ;;  %v3666_v8 = vmax.f32 %v4176_v38, %v3655_v28  ;;  %v3677_v39 = vpop.permute.xlu0 %1377  ;;  %v4177_v45 = vld [vmem:[#allocation24_spill] sm:$0xff] }
 0x344   : > { %v1554_v34 = vmul.f32 1.442695, %v1534_v18  ;;  %v1602_v11 = vmul.f32 1.442695, %v1582_v26  ;;  %v3692_v13 = vmax.f32 %v4177_v45, %v3677_v39  ;;  %v4178_v18 = vld [vmem:[#allocation27_spill] sm:$0xff] }
 0x345   : > { %v1535_v53 = vsub.f32 %v4176_v38, %v3666_v8  ;;  %v1583_v22 = vsub.f32 %v3655_v28, %v3666_v8 }
 0x346   : > { %v3687_v14 = vpop.permute.xlu1 %1379 }
 0x347   : > { %v1556_v62 = vmul.f32 1.442695, %v1535_v53  ;;  %v3697_v26 = vmax.f32 %v4178_v18, %v3687_v14  ;;  %v1584_v53 = vsub.f32 %v3677_v39, %v3692_v13 }
 0x348   : > { %v2423_v33 = vpop.eup %2422 }
 0x349   : > { %v2425_v3 = vpop.eup %2424  ;;  %4179 = vst [vmem:[#allocation19_spill] sm:$0xff] %v3697_v26  ;;  %v1606_v23 = vmul.f32 1.442695, %v1584_v53 }
 0x34a   : > { %v2427_v29 = vpop.eup %2426  ;;  %v1628_v51 = vadd.f32 %v2425_v3, %v2423_v33  ;;  %v1604_v3 = vmul.f32 1.442695, %v1583_v22  ;;  %v1537_v22 = vsub.f32 %v4178_v18, %v3697_v26  ;;  %v3714_v5 = vpop.permute.xlu1 %1383 }
 0x34b   : > { %v2429_v52 = vpop.eup %2428 }
 0x34c   : > { %2438 = vlog2.f32 %v1628_v51  ;;  %v1626_v15 = vadd.f32 %v2429_v52, %v2427_v29  ;;  %v3699_v29 = vpop.permute.xlu0 %1381  ;;  %v1560_v42 = vmul.f32 1.442695, %v1537_v22  ;;  %v4184_v22 = vld [vmem:[#allocation29_spill] sm:$0xff] }
 0x34d   : > { %v2431_v19 = vpop.eup %2430  ;;  %2440 = vpow2.f32 %v1554_v34  ;;  %v1536_v34 = vsub.f32 %v4177_v45, %v3692_v13 }
 0x34e   : > { %v2433_v33 = vpop.eup %2432  ;;  %2442 = vlog2.f32 %v1626_v15  ;;  %v3708_v15 = vsel %vm1471_vm11, 1.0, %v4134_v10  ;;  %v3756_v7 = vpop.permute.xlu1 %1387 }
 0x34f   : > { %v2435_v51 = vpop.eup %2434  ;;  %v1629_v52 = vadd.f32 %v2433_v33, %v2431_v19  ;;  %2444 = vpow2.f32 %v1602_v11  ;;  %v1585_v19 = vsub.f32 %v3687_v14, %v3697_v26  ;;  %v1558_v33 = vmul.f32 1.442695, %v1536_v34 }
 0x350   : > { %v2437_v25 = vpop.eup %2436  ;;  %2446 = vpow2.f32 %v1556_v62  ;;  %v3724_v62 = vsel %vm1473_vm13, 1.0, %v4134_v10  ;;  %v3726_v12 = vpop.permute.xlu0 %1385 }
 0x351   : > { %2448 = vlog2.f32 %v1629_v52  ;;  %v1627_v11 = vadd.f32 %v2437_v25, %v2435_v51  ;;  %v1608_v25 = vmul.f32 1.442695, %v1585_v19  ;;  %v4180_v51 = vld [vmem:[#allocation28_spill] sm:$0xff]  ;;  %v3738_v52 = vmax.f32 %v4182_v16, %v3714_v5 }
 0x352   : > { %2450 = vpow2.f32 %v1604_v3  ;;  %v3731_v3 = vmax.f32 %v4180_v51, %v3699_v29  ;;  %v3746_v19 = vmax.f32 %v4184_v22, %v3726_v12 }
 0x353   : > { %2452 = vlog2.f32 %v1627_v11  ;;  %4183 = vst [vmem:[#allocation21_spill] sm:$0xff] %v3738_v52  ;;  %v1539_v11 = vsub.f32 %v4182_v16, %v3738_v52 }
 0x354   : > { %4181 = vst [vmem:[#allocation20_spill] sm:$0xff] %v3731_v3  ;;  %2454 = vpow2.f32 %v1558_v33  ;;  %v1538_v34 = vsub.f32 %v4180_v51, %v3731_v3  ;;  %v1586_v53 = vsub.f32 %v3699_v29, %v3731_v3  ;;  %4185 = vst [vmem:[#allocation22_spill] sm:$0xff] %v3746_v19  ;;  %v1693_v33 = vsub.f32 %v3620_v31, %v4172_v6 }
 0x355   : > { %2456 = vpow2.f32 %v1606_v23  ;;  %v1587_v23 = vsub.f32 %v3714_v5, %v3738_v52  ;;  %v1564_v60 = vmul.f32 1.442695, %v1539_v11  ;;  %v3768_v31 = vsel %vm1475_vm15, 1.0, %v4134_v10  ;;  %v4188_v11 = vld [vmem:[#allocation30_spill] sm:$0xff] }
 0x356   : > { %2458 = vpow2.f32 %v1560_v42  ;;  %v1562_v20 = vmul.f32 1.442695, %v1538_v34  ;;  %v1610_v40 = vmul.f32 1.442695, %v1586_v53  ;;  %v3763_v42 = vsel %vm1474_vm14, 1.0, %v4134_v10  ;;  %4187 = vst [vmem:[#allocation25_spill] sm:$0xff] %v3768_v31 }
 0x357   : > { %2460 = vpow2.f32 %v1608_v25  ;;  %4186 = vst [vmem:[#allocation18_spill] sm:$0xff] %v3763_v42  ;;  %v1612_v3 = vmul.f32 1.442695, %v1587_v23  ;;  %v1540_v25 = vsub.f32 %v4184_v22, %v3746_v19  ;;  %v1588_v36 = vsub.f32 %v3726_v12, %v3746_v19 }
 0x358   : > { %2462 = vpow2.f32 %v1562_v20  ;;  %v1706_v53 = vmul.f32 %v3669_v58, %v1690_v1  ;;  %v3778_v20 = vmax.f32 %v4188_v11, %v3756_v7  ;;  %v1709_v43 = vmul.f32 %v3672_v57, %v1693_v33 }
 0x359   : > { %v2439_v9 = vpop.eup %2438  ;;  %2464 = vpow2.f32 %v1610_v40  ;;  %v1566_v52 = vmul.f32 1.442695, %v1540_v25  ;;  %v1614_v31 = vmul.f32 1.442695, %v1588_v36  ;;  %v1707_v19 = vmul.f32 %v3675_v41, %v1691_v55 }
 0x35a   : > { %v2441_v34 = vpop.eup %2440  ;;  %2466 = vpow2.f32 %v1564_v60  ;;  %v1541_v61 = vsub.f32 %v4188_v11, %v3778_v20  ;;  %v1647_v40 = vmul.f32 0.6931472, %v2439_v9  ;;  %v1589_v1 = vsub.f32 %v3756_v7, %v3778_v20  ;;  %v3790_v9 = vpop.permute.xlu0 %1389 }
 0x35b   : > { %v2443_v23 = vpop.eup %2442  ;;  %2468 = vpow2.f32 %v1612_v3  ;;  %v1694_v33 = vsub.f32 %v3645_v24, %v4175_v21  ;;  %v1724_v41 = vadd.f32 %v1708_v30, %v4170_v49  ;;  %v1725_v36 = vadd.f32 %v1709_v43, %v4172_v6  ;;  %v3796_v49 = vpop.permute.xlu1 %1391 }
 0x35c   : > { %v2445_v26 = vpop.eup %2444  ;;  %v1643_v42 = vmul.f32 0.6931472, %v2443_v23  ;;  %2470 = vpow2.f32 %v1566_v52  ;;  %v1568_v60 = vmul.f32 1.442695, %v1541_v61  ;;  %v1616_v25 = vmul.f32 1.442695, %v1589_v1 }
 0x35d   : > { %v2447_v58 = vpop.eup %2446  ;;  %v1630_v56 = vadd.f32 %v2445_v26, %v2441_v34  ;;  %2472 = vpow2.f32 %v1614_v31  ;;  %v1722_v52 = vadd.f32 %v1706_v53, %v4171_v27  ;;  %v1676_v24 = vadd.f32 %v1647_v40, %v3608_v32  ;;  %v4189_v27 = vld [vmem:[#allocation37_spill] sm:$0xff] }
 0x35e   : > { %v2449_v37 = vpop.eup %2448  ;;  %v1674_v57 = vadd.f32 %v1643_v42, %v3618_v47  ;;  %v1723_v31 = vadd.f32 %v1707_v19, %v4173_v17  ;;  %v1710_v23 = vmul.f32 %v3680_v35, %v1694_v33  ;;  %v3801_v53 = vmax.f32 %v4189_v27, %v3790_v9 }
 0x35f   : > { %v2451_v55 = vpop.eup %2450  ;;  %v1649_v3 = vmul.f32 0.6931472, %v2449_v37  ;;  %2474 = vlog2.f32 %v1630_v56  ;;  %v1695_v17 = vsub.f32 %v3655_v28, %v4176_v38  ;;  %v4190_v56 = vld [vmem:[#allocation41_spill] sm:$0xff]  ;;  %v3817_v28 = vpop.permute.xlu0 %1393 }
 0x360   : > { %v2453_v26 = vpop.eup %2452  ;;  %v1631_v34 = vadd.f32 %v2451_v55, %v2447_v58  ;;  %2476 = vpow2.f32 %v1568_v60  ;;  %v1738_v30 = vsub.f32 %v1674_v57, %v1722_v52  ;;  %v1696_v58 = vsub.f32 %v3677_v39, %v4177_v45 }
 0x361   : > { %v2455_v47 = vpop.eup %2454  ;;  %v1645_v42 = vmul.f32 0.6931472, %v2453_v26  ;;  %2478 = vpow2.f32 %v1616_v25  ;;  %v1677_v43 = vadd.f32 %v1649_v3, %v3628_v2  ;;  %v1542_v35 = vsub.f32 %v4189_v27, %v3801_v53 }
 0x362   : > { %v2457_v37 = vpop.eup %2456  ;;  %2480 = vlog2.f32 %v1631_v34  ;;  %v1590_v40 = vsub.f32 %v3790_v9, %v3801_v53  ;;  %v3815_v1 = vmax.f32 %v4190_v56, %v3796_v49  ;;  %v1740_v2 = vsub.f32 %v1676_v24, %v1724_v41 }
 0x363   : > { %v2459_v6 = vpop.eup %2458  ;;  %v1675_v32 = vadd.f32 %v1645_v42, %v3634_v54  ;;  %v1632_v19 = vadd.f32 %v2457_v37, %v2455_v47  ;;  %v1754_v60 = vmul.f32 %v1738_v30, %v3485_v59  ;;  %v1570_v39 = vmul.f32 1.442695, %v1542_v35  ;;  %v4191_v42 = vld [vmem:[#allocation34_spill] sm:$0xff] }
 0x364   : > { %v2461_v61 = vpop.eup %2460  ;;  %v1618_v55 = vmul.f32 1.442695, %v1590_v40  ;;  %v1543_v3 = vsub.f32 %v4190_v56, %v3815_v1  ;;  %v1741_v26 = vsub.f32 %v1677_v43, %v1725_v36  ;;  %v1591_v41 = vsub.f32 %v3796_v49, %v3815_v1 }
 0x365   : > { %v1739_v54 = vsub.f32 %v1675_v32, %v1723_v31  ;;  %2482 = vlog2.f32 %v1632_v19  ;;  %v1633_v57 = vadd.f32 %v2461_v61, %v2459_v6  ;;  %v2463_v33 = vpop.eup %2462  ;;  %v3827_v59 = vmax.f32 %v4191_v42, %v3817_v28 }
 0x366   : > { %v2465_v25 = vpop.eup %2464  ;;  %v1572_v24 = vmul.f32 1.442695, %v1543_v3  ;;  %v1756_v37 = vmul.f32 %v1740_v2, %v3125_v0  ;;  %v1620_v36 = vmul.f32 1.442695, %v1591_v41  ;;  %v1757_v61 = vmul.f32 %v1741_v26, %v3506_v4  ;;  %v3836_v0 = vpop.permute.xlu1 %1395  ;;  %v4192_v26 = vld [vmem:[#allocation39_spill] sm:$0xff] }
 0x367   : > { %v1755_v52 = vmul.f32 %v1739_v54, %v3489_v44  ;;  %2484 = vlog2.f32 %v1633_v57  ;;  %v2467_v34 = vpop.eup %2466  ;;  %v1634_v47 = vadd.f32 %v2465_v25, %v2463_v33  ;;  %v1544_v43 = vsub.f32 %v4191_v42, %v3827_v59 }
 0x368   : > { %2486 = vpow2.f32 %v1570_v39  ;;  %v2469_v31 = vpop.eup %2468  ;;  %v1592_v32 = vsub.f32 %v3817_v28, %v3827_v59  ;;  %v1726_v4 = vadd.f32 %v1710_v23, %v4175_v21  ;;  %v1712_v25 = vmul.f32 %v3719_v63, %v1696_v58 }
 0x369   : > { %v1770_v30 = vadd.f32 %v1755_v52, %v1754_v60  ;;  %2488 = vpow2.f32 %v1618_v55  ;;  %v2471_v6 = vpop.eup %2470  ;;  %v1635_v44 = vadd.f32 %v2469_v31, %v2467_v34  ;;  %v1574_v54 = vmul.f32 1.442695, %v1544_v43 }
 0x36a   : > { %2490 = vlog2.f32 %v1634_v47  ;;  %v2473_v19 = vpop.eup %2472  ;;  %v1622_v57 = vmul.f32 1.442695, %v1592_v32  ;;  %v1711_v55 = vmul.f32 %v3708_v15, %v1695_v17  ;;  %v3843_v52 = vmax.f32 %v4192_v26, %v3836_v0 }
 0x36b   : > { %v1771_v35 = vadd.f32 %v1770_v30, %v1756_v37  ;;  %2492 = vpow2.f32 %v1572_v24  ;;  %v1636_v2 = vadd.f32 %v2473_v19, %v2471_v6  ;;  %v1697_v47 = vsub.f32 %v3687_v14, %v4178_v18 }
 0x36c   : > { %v2475_v40 = vpop.eup %2474  ;;  %2494 = vlog2.f32 %v1635_v44  ;;  %v1545_v21 = vsub.f32 %v4192_v26, %v3843_v52  ;;  %v1593_v63 = vsub.f32 %v3836_v0, %v3843_v52  ;;  %v1727_v17 = vadd.f32 %v1711_v55, %v4176_v38 }
 0x36d   : > { %v2477_v33 = vpop.eup %2476  ;;  %v1772_v60 = vadd.f32 %v1771_v35, %v1757_v61  ;;  %v1651_v39 = vmul.f32 0.6931472, %v2475_v40  ;;  %2496 = vpow2.f32 %v1620_v36  ;;  %v1698_v31 = vsub.f32 %v3699_v29, %v4180_v51  ;;  %v4193_v40 = vld [vmem:[#allocation42_spill] sm:$0xff] }
 0x36e   : > { %v2479_v3 = vpop.eup %2478  ;;  %2498 = vlog2.f32 %v1636_v2  ;;  %v1576_v37 = vmul.f32 1.442695, %v1545_v21  ;;  %v1624_v30 = vmul.f32 1.442695, %v1593_v63  ;;  %v1728_v44 = vadd.f32 %v1712_v25, %v4177_v45  ;;  %v4194_v2 = vld [vmem:[#allocation18_spill] sm:$0xff] }
 0x36f   : > { %v2481_v41 = vpop.eup %2480  ;;  %v1678_v34 = vadd.f32 %v1651_v39, %v3652_v48  ;;  %v1637_v24 = vadd.f32 %v2479_v3, %v2477_v33  ;;  %2500 = vpow2.f32 %v1574_v54  ;;  %v2127_v48 = vsel %vm1476_vm0, 1.0, %v4134_v10  ;;  %v2518_v54 = vld [vmem:[%s2904_s30 + $0x58] sm:$0xff] }
 0x370   : > { %v1653_v15 = vmul.f32 0.6931472, %v2481_v41  ;;  %2502 = vpow2.f32 %v1622_v57  ;;  %v1713_v38 = vmul.f32 %v3724_v62, %v1697_v47  ;;  %v1699_v32 = vsub.f32 %v3714_v5, %v4182_v16  ;;  %v4195_v5 = vld [vmem:[#allocation19_spill] sm:$0xff] }
 0x371   : > { %v1742_v23 = vsub.f32 %v1678_v34, %v1726_v4  ;;  %2504 = vlog2.f32 %v1637_v24  ;;  %v1714_v62 = vmul.f32 %v4194_v2, %v1698_v31  ;;  %vm1477_vm1 = vcmp.eq.f32.partialorder %v2518_v54, 1.0  ;;  %v4197_v47 = vld [vmem:[#allocation43_spill] sm:$0xff]  ;;  %v2519_v54 = vld [vmem:[%s2904_s30 + $0x60] sm:$0xff] }
 0x372   : > { %v2483_v58 = vpop.eup %2482  ;;  %v1679_v14 = vadd.f32 %v1653_v15, %v3666_v8  ;;  %v1700_v8 = vsub.f32 %v3726_v12, %v4184_v22  ;;  %2506 = vpow2.f32 %v1576_v37  ;;  %v1729_v12 = vadd.f32 %v1713_v38, %v4178_v18  ;;  %v4200_v38 = vld [vmem:[#allocation21_spill] sm:$0xff] }
 0x373   : > { %v1758_v36 = vmul.f32 %v1742_v23, %v3510_v46  ;;  %v1655_v6 = vmul.f32 0.6931472, %v2483_v58  ;;  %2508 = vpow2.f32 %v1624_v30  ;;  %v1701_v21 = vsub.f32 %v3756_v7, %v4188_v11  ;;  %v4198_v23 = vld [vmem:[#allocation20_spill] sm:$0xff] }
 0x374   : > { %v2485_v43 = vpop.eup %2484  ;;  %v1743_v50 = vsub.f32 %v1679_v14, %v1727_v17  ;;  %v1716_v41 = vmul.f32 %v2127_v48, %v1700_v8  ;;  %v1730_v18 = vadd.f32 %v1714_v62, %v4180_v51  ;;  %v2128_v14 = vsel %vm1477_vm1, 1.0, %v4134_v10  ;;  %v4199_v48 = vld [vmem:[#allocation44_spill] sm:$0xff] }
 0x375   : > { %v2487_v29 = vpop.eup %2486  ;;  %v1773_v19 = vadd.f32 %v1772_v60, %v1758_v36  ;;  %v1680_v61 = vadd.f32 %v1655_v6, %v3692_v13  ;;  %v1657_v46 = vmul.f32 0.6931472, %v2485_v43  ;;  %v4196_v13 = vld [vmem:[#allocation25_spill] sm:$0xff]  ;;  %vm1478_vm2 = vcmp.eq.f32.partialorder %v2519_v54, 1.0 }
 0x376   : > { %v2489_v35 = vpop.eup %2488  ;;  %v1759_v45 = vmul.f32 %v1743_v50, %v4193_v40  ;;  %v1715_v25 = vmul.f32 %v4196_v13, %v1699_v32  ;;  %v1732_v51 = vadd.f32 %v1716_v41, %v4184_v22  ;;  %v4202_v40 = vld [vmem:[#allocation22_spill] sm:$0xff]  ;;  %v2129_v13 = vsel %vm1478_vm2, 1.0, %v4134_v10 }
 0x377   : > { %v2491_v57 = vpop.eup %2490  ;;  %v1744_v33 = vsub.f32 %v1680_v61, %v1728_v44  ;;  %v1681_v39 = vadd.f32 %v1657_v46, %v4195_v5  ;;  %v1638_v55 = vadd.f32 %v2489_v35, %v2487_v29  ;;  %v1717_v29 = vmul.f32 %v2128_v14, %v1701_v21  ;;  %v4201_v61 = vld [vmem:[#allocation45_spill] sm:$0xff] }
 0x378   : > { %v2493_v3 = vpop.eup %2492  ;;  %v1774_v60 = vadd.f32 %v1773_v19, %v1759_v45  ;;  %v1659_v4 = vmul.f32 0.6931472, %v2491_v57  ;;  %v1731_v43 = vadd.f32 %v1715_v25, %v4182_v16  ;;  %v4203_v16 = vld [vmem:[#allocation32_spill] sm:$0xff] }
 0x379   : > { %v2495_v34 = vpop.eup %2494  ;;  %v1760_v24 = vmul.f32 %v1744_v33, %v4197_v47  ;;  %v1745_v15 = vsub.f32 %v1681_v39, %v1729_v12  ;;  %2510 = vlog2.f32 %v1638_v55  ;;  %v1733_v12 = vadd.f32 %v1717_v29, %v4188_v11  ;;  %v4205_v11 = vld [vmem:[#allocation35_spill] sm:$0xff] }
 0x37a   : > { %v2497_v63 = vpop.eup %2496  ;;  %v1682_v17 = vadd.f32 %v1659_v4, %v4198_v23  ;;  %v1661_v58 = vmul.f32 0.6931472, %v2495_v34  ;;  %v1702_v55 = vsub.f32 %v3790_v9, %v4189_v27  ;;  %v2520_v34 = vld [vmem:[%s2904_s30 + $0x68] sm:$0xff]  ;;  %v2521_v23 = vld [vmem:[%s2904_s30 + $0x70] sm:$0xff] }
 0x37b   : > { %v2499_v31 = vpop.eup %2498  ;;  %v1775_v37 = vadd.f32 %v1774_v60, %v1760_v24  ;;  %v1761_v30 = vmul.f32 %v1745_v15, %v4199_v48  ;;  %v1639_v36 = vadd.f32 %v2497_v63, %v2493_v3  ;;  %v4204_v60 = vld [vmem:[#allocation33_spill] sm:$0xff]  ;;  %vm1479_vm3 = vcmp.eq.f32.partialorder %v2520_v34, 1.0 }
 0x37c   : > { %v2501_v6 = vpop.eup %2500  ;;  %v1746_v44 = vsub.f32 %v1682_v17, %v1730_v18  ;;  %v1683_v7 = vadd.f32 %v1661_v58, %v4200_v38  ;;  %v1663_v50 = vmul.f32 0.6931472, %v2499_v31  ;;  %v1718_v15 = vmul.f32 %v2129_v13, %v1702_v55 }
 0x37d   : > { %v2503_v32 = vpop.eup %2502  ;;  %v1776_v8 = vadd.f32 %v1775_v37, %v1761_v30  ;;  %2512 = vlog2.f32 %v1639_v36  ;;  %v2130_v63 = vsel %vm1479_vm3, 1.0, %v4134_v10  ;;  %vm1480_vm4 = vcmp.eq.f32.partialorder %v2521_v23, 1.0 }
 0x37e   : > { %v2505_v19 = vpop.eup %2504  ;;  %v1762_v46 = vmul.f32 %v1746_v44, %v4201_v61  ;;  %v1747_v35 = vsub.f32 %v1683_v7, %v1731_v43  ;;  %v1684_v45 = vadd.f32 %v1663_v50, %v4202_v40  ;;  %v1640_v2 = vadd.f32 %v2503_v32, %v2501_v6  ;;  %v2522_v6 = vld [vmem:[%s2904_s30 + $0x78] sm:$0xff]  ;;  %s1849_s30 = sshll.u32 %s2991_s7, 4  ;;  %s2585_s7 = scalar_lea.vmem %s2584_s12, 2048  ;;  %s3920_s30 = int_to_ptr.vmem [resolvable:$true] %s1849_s30 }
 0x37f   : > { %v1665_v62 = vmul.f32 0.6931472, %v2505_v19  ;;  %v2507_v39 = vpop.eup %2506  ;;  %v1704_v58 = vsub.f32 %v3817_v28, %v4191_v42  ;;  %v1734_v31 = vadd.f32 %v1718_v15, %v4189_v27  ;;  %vm1481_vm5 = vcmp.eq.f32.partialorder %v2522_v6, 1.0  ;;  %s2579_s28 = scalar_lea.vmem %s3920_s30, 1024  ;;  %p2586_p0 = scmp.lt.s32.totalorder %s3920_s30, %s2584_s12 }
 0x380   : > { %v1777_v57 = vadd.f32 %v1776_v8, %v1762_v46  ;;  %v1763_v33 = vmul.f32 %v1747_v35, %v4203_v16  ;;  %v1748_v5 = vsub.f32 %v1684_v45, %v1732_v51  ;;  %2514 = vlog2.f32 %v1640_v2  ;;  %v2509_v3 = vpop.eup %2508  ;;  %v4207_v46 = vld [vmem:[#allocation36_spill] sm:$0xff]  ;;  %v4208_v2 = vld [vmem:[#allocation38_spill] sm:$0xff]  ;;  %p2580_p1 = scmp.ne.s32.totalorder %s3920_s30, %s2579_s28  ;;  %p2587_p2 = scmp.lt.s32.totalorder %s2585_s7, %s2579_s28 }
 0x381   : > { %v1685_v22 = vadd.f32 %v1665_v62, %v3778_v20  ;;  %v1641_v47 = vadd.f32 %v2509_v3, %v2507_v39  ;;  %v1703_v20 = vsub.f32 %v3796_v49, %v4190_v56  ;;  %v2131_v49 = vsel %vm1480_vm4, 1.0, %v4134_v10 }
 0x382   : > { %v1764_v4 = vmul.f32 %v1748_v5, %v4204_v60  ;;  %v1778_v25 = vadd.f32 %v1777_v57, %v1763_v33  ;;  %v1720_v44 = vmul.f32 %v2131_v49, %v1704_v58  ;;  %v1705_v28 = vsub.f32 %v3836_v0, %v4192_v26  ;;  %p2581_p7 = pnand %p2580_p1, %p4210_p12  ;;  %p2588_p4 = por %p2587_p2, %p2586_p0 }
 0x383   : > { %v1749_v41 = vsub.f32 %v1685_v22, %v1733_v12  ;;  %2516 = vlog2.f32 %v1641_v47  ;;  %v1719_v37 = vmul.f32 %v2130_v63, %v1703_v20  ;;  %v2132_v32 = vsel %vm1481_vm5, 1.0, %v4134_v10 }
 0x384   : > { %v1779_v24 = vadd.f32 %v1778_v25, %v1764_v4  ;;  %v1736_v19 = vadd.f32 %v1720_v44, %v4191_v42  ;;  %v1721_v61 = vmul.f32 %v2132_v32, %v1705_v28  ;;  %p2582_p10 = pneg %p2581_p7 }
 0x385   : > { %v1765_v9 = vmul.f32 %v1749_v41, %v4205_v11  ;;  %v1735_v43 = vadd.f32 %v1719_v37, %v4190_v56 }
 0x386   : > { %v2511_v21 = vpop.eup %2510  ;;  %v1737_v10 = vadd.f32 %v1721_v61, %v4192_v26  ;;  %p2589_p9 = pnand %p2588_p4, %p2582_p10 }
 0x387   : > { %v1667_v17 = vmul.f32 0.6931472, %v2511_v21  ;;  %v1780_v18 = vadd.f32 %v1779_v24, %v1765_v9 }
 0x389   : > { %v1686_v14 = vadd.f32 %v1667_v17, %v3801_v53  ;;  %v4206_v53 = vld [vmem:[#allocation40_spill] sm:$0xff] }
 0x38a   : > { %v2513_v48 = vpop.eup %2512 }
 0x38b   : > { %v1750_v30 = vsub.f32 %v1686_v14, %v1734_v31  ;;  %v1669_v36 = vmul.f32 0.6931472, %v2513_v48 }
 0x38d   : > { %v2515_v38 = vpop.eup %2514  ;;  %v1687_v7 = vadd.f32 %v1669_v36, %v3815_v1  ;;  %v1766_v50 = vmul.f32 %v1750_v30, %v4206_v53 }
 0x38e   : > { %v1671_v27 = vmul.f32 0.6931472, %v2515_v38 }
 0x38f   : > { %v1751_v8 = vsub.f32 %v1687_v7, %v1735_v43  ;;  %v1781_v51 = vadd.f32 %v1780_v18, %v1766_v50 }
 0x390   : > { %v1688_v29 = vadd.f32 %v1671_v27, %v3827_v59  ;;  %v2517_v1 = vpop.eup %2516  ;;  %v4209_v59 = vld [vmem:[#allocation46_spill] sm:$0xff] }
 0x391   : > { %v1767_v35 = vmul.f32 %v1751_v8, %v4207_v46  ;;  %v1673_v56 = vmul.f32 0.6931472, %v2517_v1 }
 0x392   : > { %v1752_v40 = vsub.f32 %v1688_v29, %v1736_v19 }
 0x393   : > { %v1782_v45 = vadd.f32 %v1781_v51, %v1767_v35  ;;  %v1689_v62 = vadd.f32 %v1673_v56, %v3843_v52 }
 0x394   : > { %v1768_v0 = vmul.f32 %v1752_v40, %v4208_v2 }
 0x395   : > { %v1753_v57 = vsub.f32 %v1689_v62, %v1737_v10 }
 0x396   : > { %v1783_v54 = vadd.f32 %v1782_v45, %v1768_v0 }
 0x397   : > { %v1769_v42 = vmul.f32 %v1753_v57, %v4209_v59 }
 0x399   : > { %v1784_v16 = vadd.f32 %v1783_v54, %v1769_v42 }
 0x39b   : > { %1785 = vadd.xlane.f32.xlu1 %v1784_v16 }
 0x39c   : > { %v1357_v33 = vpop.xlane.xlu0 %1356 }
 0x39d   : > { %v1358_v5 = vrot.slane %v1357_v33, 4 }
 0x39f   : > { %v1359_v39 = vadd.f32 %v1358_v5, %v1357_v33 }
 0x3a1   : > { %v1360_v22 = vrot.slane %v1359_v39, 2 }
 0x3a3   : > { %v1361_v12 = vadd.f32 %v1360_v22, %v1359_v39 }
 0x3a5   : > { %v1362_v55 = vrot.slane %v1361_v12, 1 }
 0x3a7   : > { %v1363_v3 = vadd.f32 %v1362_v55, %v1361_v12 }
 0x3a9   : > { %2330 = vpush %v1363_v3 }
 0x3aa   : > { %2592 = shalt.err (!%p2589_p9)
}
 0x3ab   : > { %s2593_s19 = scalar_lea.hbm %s3926_s26, 1024  ;;  %s2597_s15 = scalar_lea.hbm %s3999_s9, 2048 }
 0x3ac   : > { %p2594_p11 = scmp.ne.s32.totalorder %s3926_s26, %s2593_s19  ;;  %p2598_p8 = scmp.lt.s32.totalorder %s3926_s26, %s3999_s9 }
 0x3ad   : > { %p2599_p6 = scmp.lt.s32.totalorder %s2597_s15, %s2593_s19 }
 0x3ae   : > { %p2595_p3 = pnand %p2594_p11, %p4210_p12 }
 0x3af   : > { %p2600_p13 = por %p2599_p6, %p2598_p8 }
 0x3b0   : > { %p2596_p5 = pneg %p2595_p3 }
 0x3b2   : > { %p2601_p1 = pnand %p2600_p13, %p2596_p5 }
 0x3b4   : > { %2604 = shalt.err (!%p2601_p1)
}
 0x3b5   : > { %s2686_s23 = smov 64   ;;  %s2687_s18 = smov 4   ;;  %v1810_v26 = vpop.xlane.xlu0 %1809  ;;  %v4211_v21 = vld [vmem:[#allocation23_spill] sm:$0xff] }
 0x3b6   : > { %2340 = dma.vmem_to_hbm [thread:$0]  (%p4210_p12), %s3920_s30, 1024, %s3926_s26, %s1831_s29, %s2686_s23, %s2686_s23, %s2687_s18   ;;  %v1811_v52 = vrot.slane %v1810_v26, 4  ;;  %vm1818_vm7 = vcmp.eq.s32.totalorder %v4211_v21, 0  ;;  %vm1821_vm6 = vcmp.eq.s32.totalorder %v4211_v21, 1  ;;  %vm1825_vm8 = vcmp.eq.s32.totalorder %v4211_v21, 2 }
 0x3b7   : > { %s2015_s30 = sshll.u32 %s2900_s22, 3  ;;  %s2137_s11 = sshll.u32 %s2765_s17, 7 }
 0x3b8   : > { %v1812_v60 = vadd.f32 %v1811_v52, %v1810_v26  ;;  %s444_s12 = scalar_lea.vmem [#allocation8], %s2015_s30  ;;  %s1863_s27 = scalar_lea.hbm %s4000_s10, %s2137_s11 }
 0x3b9   : > { %s1865_s7 = sshll.u32 %s444_s12, 4  ;;  %s1836_s15 = scalar_lea.sflag [#allocation9], %s2900_s22  ;;  %s1866_s7 = int_to_ptr.vmem [resolvable:$true] %s1865_s7 }
 0x3ba   : > { %v1813_v4 = vrot.slane %v1812_v60, 2  ;;  %s2605_s20 = scalar_lea.vmem %s1866_s7, 128  ;;  %s2688_s21 = smov [#allocation8]  }
 0x3bb   : > { %p2606_p7 = scmp.ne.s32.totalorder %s1866_s7, %s2605_s20  ;;  %s2609_s23 = sshll.u32 %s2688_s21, 4  ;;  %s2610_s23 = int_to_ptr.vmem [resolvable:$false] %s2609_s23 }
 0x3bc   : > { %v1814_v34 = vadd.f32 %v1813_v4, %v1812_v60  ;;  %s2611_s17 = scalar_lea.vmem %s2610_s23, 256  ;;  %p2612_p2 = scmp.lt.s32.totalorder %s1866_s7, %s2610_s23 }
 0x3bd   : > { %p2607_p10 = pnand %p2606_p7, %p4210_p12  ;;  %p2613_p4 = scmp.lt.s32.totalorder %s2611_s17, %s2605_s20 }
 0x3be   : > { %v1815_v15 = vrot.slane %v1814_v34, 1 }
 0x3bf   : > { %p2608_p0 = pneg %p2607_p10  ;;  %p2614_p9 = por %p2613_p4, %p2612_p2 }
 0x3c0   : > { %v1816_v9 = vadd.f32 %v1815_v15, %v1814_v34 }
 0x3c1   : > { %p2615_p11 = pnand %p2614_p9, %p2608_p0 }
 0x3da   : > { %s2331_s28 = spop %2330 }
 0x3db   : > { %v1819_v63 = vstv %s2331_s28 }
 0x3dc   : > { %v1820_v17 = vsel %vm1818_vm7, %v1819_v63, 0.0 }
 0x424   : > { %v1786_v13 = vpop.xlane.xlu1 %1785 }
 0x425   : > { %v1787_v25 = vrot.slane %v1786_v13, 4 }
 0x427   : > { %v1788_v41 = vadd.f32 %v1787_v25, %v1786_v13 }
 0x429   : > { %v1789_v47 = vrot.slane %v1788_v41, 2 }
 0x42b   : > { %v1790_v24 = vadd.f32 %v1789_v47, %v1788_v41 }
 0x42d   : > { %v1791_v20 = vrot.slane %v1790_v24, 1 }
 0x42f   : > { %v1792_v11 = vadd.f32 %v1791_v20, %v1790_v24 }
 0x431   : > { %2332 = vpush %v1792_v11 }
 0x432   : > { %2334 = vpush %v1816_v9 }
 0x462   : > { %s2333_s26 = spop %2332 }
 0x463   : > { %v1822_v23 = vstv %s2333_s26  ;;  %s2335_s29 = spop %2334 }
 0x464   : > { %v1823_v18 = vsel %vm1821_vm6, %v1822_v23, 0.0  ;;  %v1826_v58 = vstv %s2335_s29 }
 0x465   : > { %v1824_v14 = vadd.f32 %v1823_v18, %v1820_v17  ;;  %v1827_v31 = vsel %vm1825_vm8, %v1826_v58, 0.0 }
 0x467   : > { %v1828_v37 = vadd.f32 %v1827_v31, %v1824_v14 }
 0x469   : > { %1829 = vst [vmem:[%s444_s12] sm:$0xff] %v1828_v37 }
 0x46a   : > { %2618 = shalt.err (!%p2615_p11)
}
 0x46b   : > { %s2619_s18 = scalar_lea.hbm %s1863_s27, 128  ;;  %s2623_s30 = scalar_lea.hbm %s4000_s10, 256 }
 0x46c   : > { %p2620_p3 = scmp.ne.s32.totalorder %s1863_s27, %s2619_s18  ;;  %p2624_p6 = scmp.lt.s32.totalorder %s1863_s27, %s4000_s10 }
 0x46d   : > { %p2625_p13 = scmp.lt.s32.totalorder %s2623_s30, %s2619_s18 }
 0x46e   : > { %p2621_p5 = pnand %p2620_p3, %p4210_p12 }
 0x46f   : > { %p2626_p1 = por %p2625_p13, %p2624_p6 }
 0x470   : > { %p2622_p8 = pneg %p2621_p5 }
 0x472   : > { %p2627_p7 = pnand %p2626_p1, %p2622_p8 }
 0x474   : > { %2630 = shalt.err (!%p2627_p7)
}
 0x475   : > { %2341 = dma.vmem_to_hbm [thread:$0]  (%p4210_p12), %s1866_s7, 128, %s1863_s27, %s1836_s15  }
 0x476 PF: > { %s4212_s11 = sld [smem:[#allocation17_spill]]  ;;  %s1877_s12 = sand.u32 1, %s2665_s13  }
 0x477   : > { %p4214_p0 = scmp.ge.s32.totalorder %s2677_s16, 2  ;;  %s1878_s19 = scalar_lea.sflag [#allocation4], %s1877_s12 }
 0x47c   : > { %p4213_p10 = scmp.ne.s32.totalorder %s4212_s11, 0 }
 0x47e   : > { %p2352_p2 = pnand %p4214_p0, %p4213_p10 }
 0x480   : > { %p2353_p4 = pneg %p2352_p2 }
 0x482   : > { %2656 = dma.done.wait (%p2353_p4), %s1878_s19, 1024  }
 0x483   : > { %2658 = vsyncadd (%p2353_p4), %s1878_s19, 4294966272  ;;  %s1887_s24 = scalar_lea.sflag [#allocation9], %s1877_s12 }
 0x484   : > { %2660 = dma.done.wait (%p2353_p4), %s1887_s24, 128  }
 0x485   : > { %2662 = vsyncadd (%p2353_p4), %s1887_s24, 4294967168  ;;  %s4215_s16 = sld [smem:[#allocation15_spill]]  ;;  %s4218_s13 = smov %s2669_s14 }
 0x486   : > { %s4216_s20 = sld [smem:[#allocation14_spill]] }
 0x487   : > { %s4217_s15 = sld [smem:[#allocation16_spill]] }
 0x48b   : > { %p30_p12 = scmp.ge.s32.totalorder %s4215_s16, 4  }
 0x48c   : > { %s4219_s14 = smov %s4216_s20 }
 0x48d   :  { %32 = sbr.rel (!%p30_p12) target bundleno = 11 (0xb), region = 134 }
 0x492   :  { %1892 = vsyncpa [#allocation3], 1 }
 0x493   :  { %1894 = vsyncpa [#allocation3 + $0x1], 1 }
 0x494   :  { %1895 = vsyncpa [#allocation6], 1 }
 0x495   :  { %1897 = vsyncpa [#allocation6 + $0x1], 1 }
 0x496   :  { %1898 = vsyncpa [#allocation4], 1 }
 0x497   :  { %1900 = vsyncpa [#allocation4 + $0x1], 1 }
 0x498   :  { %1901 = vsyncpa [#allocation9], 1 }
 0x499   :  { %1903 = vsyncpa [#allocation9 + $0x1], 1 }

</bundles_post_ra>
